<compile_context>
chip_gen: v7x
topology: tpu7x:2x2x1
jax: 0.10.0
libtpu: 0.0.40
codegen_flags: <defaults>
</compile_context>

<pallas_src>
import functools

import jax
import jax.numpy as jnp
from jax import lax
from jax.experimental import pallas as pl
from jax.experimental.pallas import tpu as pltpu


# -----------------------------------------------------------------------------
# Fused kernel
# -----------------------------------------------------------------------------
def _conv_model_kernel(x_ref, *args, num, H, W, imgs, P, T):
    """Fused ConvModel forward for `imgs` images (batch folded into matmul M).

    x_ref : (imgs, H, W*Cin)             flattened-NHWC input rows (f32)
    args  : num * (t1, b1, t2, b2) refs, then o_ref, then scratch pad_a, pad_b
      t1: (5, W*Cin,  W*Cmid) bf16   b1: (1, W*Cmid) f32
      t2: (5, W*Cmid, W*Cin ) bf16   b2: (1, W*Cin ) f32
    o_ref : (imgs, H, W*Cin) f32
    pad_a : VMEM (T + imgs*P + 2, W*Cin ) f32
    pad_b : VMEM (T + imgs*P + 2, W*Cmid) f32

    Image g's interior lives at rows [T + g*P, T + g*P + H) of both pads
    (T and P are multiples of 8 -> all interior writes are sublane-aligned);
    its 2-row top/bottom halos are the only rows that need zeroing.  Rows in
    the inter-image gaps are never read for valid outputs.
    """
    K = 5                      # 5x5 kernel, padding=2
    M = imgs * P               # folded matmul row count
    w_refs = args[:4 * num]
    o_ref = args[4 * num]
    pad_a = args[4 * num + 1]
    pad_b = args[4 * num + 2]

    # Zero only the halo rows, every grid step (each v7x core has its own
    # scratch, so this must NOT be gated on program_id == 0).
    for g in range(imgs):
        s = T + g * P
        for ref in (pad_a, pad_b):
            z = jnp.zeros((2, ref.shape[1]), jnp.float32)
            ref[s - 2:s, :] = z                    # top halo of image g
            ref[s + H:s + H + 2, :] = z            # bottom halo of image g

    # Load images into the sublane-aligned interior rows.
    for g in range(imgs):
        pad_a[T + g * P:T + g * P + H, :] = x_ref[g]

    def conv_rows(src_ref, t_ref, b_ref):
        # One 5x5 "same" conv as 5 lane-dense MXU matmuls over the folded batch:
        #   acc(M, W*Cout) = sum_kh  src[T-2+kh : T-2+kh+M, :] @ T[kh]
        # bf16 operands, f32 accumulation.  Rows outside image interiors hold
        # garbage but are never read back.
        def mm(kh):
            src = src_ref[T - 2 + kh:T - 2 + kh + M, :].astype(jnp.bfloat16)
            return jnp.dot(src, t_ref[kh], preferred_element_type=jnp.float32)
        acc = mm(0)
        for kh in range(1, K):                     # static unroll: 5 MXU pushes
            acc = acc + mm(kh)
        return acc + b_ref[...]                    # (1, W*Cout) f32 bias bcast

    for i in range(num):
        t1, b1, t2, b2 = w_refs[4 * i:4 * i + 4]
        # conv1: ins -> mid (no activation); interiors written back aligned.
        a1 = conv_rows(pad_a, t1, b1)
        for g in range(imgs):
            pad_b[T + g * P:T + g * P + H, :] = a1[g * P:g * P + H]
        # conv2: mid -> ins, fused LeakyReLU(0.01) in f32.
        y = conv_rows(pad_b, t2, b2)
        y = jnp.maximum(y, 0.01 * y)
        if i + 1 < num:
            for g in range(imgs):                  # feed next block, VMEM-resident
                pad_a[T + g * P:T + g * P + H, :] = y[g * P:g * P + H]
        else:
            for g in range(imgs):                  # only final result hits HBM
                o_ref[g] = y[g * P:g * P + H]


# -----------------------------------------------------------------------------
# One-time parameter preprocessing (hoisted out of the forward pass)
# -----------------------------------------------------------------------------
def _build_row_toeplitz(w_hwio, W):
    """(5,5,Cin,Cout) HWIO weights -> (5, W*Cin, W*Cout) row-Toeplitz matrices.

    T[kh, a*Cin + ci, b*Cout + co] = w_hwio[kh, a - b + 2, ci, co] if the tap
    is in range else 0: folds the W-direction zero padding into the weights
    (cross-correlation, matching nn.Conv2d).
    """
    K = w_hwio.shape[0]
    pad = K // 2
    Cin, Cout = w_hwio.shape[2], w_hwio.shape[3]
    sel = jnp.arange(W)[:, None] - jnp.arange(W)[None, :] + pad        # (Win, Wout)
    onehot = (sel[None, :, :] == jnp.arange(K)[:, None, None])
    onehot = onehot.astype(w_hwio.dtype)                               # (K, Win, Wout)
    T = jnp.einsum("kab,hkio->haibo", onehot, w_hwio)                  # (5,W,Cin,W,Cout)
    return T.reshape(K, W * Cin, W * Cout)


def prepare_params(params, W, weight_dtype=jnp.bfloat16):
    """OIHW conv params -> kernel-ready (bf16 Toeplitz weights, f32 tiled biases)."""
    prepared = []
    for (w1, b1, w2, b2) in params:
        t1 = _build_row_toeplitz(jnp.transpose(w1, (2, 3, 1, 0)), W).astype(weight_dtype)
        t2 = _build_row_toeplitz(jnp.transpose(w2, (2, 3, 1, 0)), W).astype(weight_dtype)
        bb1 = jnp.tile(b1, W).reshape(1, -1).astype(jnp.float32)   # row[b*C+c] = b1[c]
        bb2 = jnp.tile(b2, W).reshape(1, -1).astype(jnp.float32)
        prepared.append((t1, bb1, t2, bb2))
    return prepared


def _images_per_step(batch):
    """Images per grid step: 1 on multi-TensorCore chips (v7x/v5p/v4 — let the
    'parallel' grid split the batch across cores), whole batch on single-TC
    chips (v5e/v6e — fold the batch into the matmul M dimension)."""
    try:
        kind = jax.devices()[0].device_kind.lower()
    except Exception:
        kind = ""
    multi_tc = any(tag in kind for tag in ("v7", "7x", "v5p", "v4"))
    return 1 if multi_tc else batch


# -----------------------------------------------------------------------------
# Forward wrapper
# -----------------------------------------------------------------------------
def conv_model_forward(x_nchw, prepared, imgs_per_step=None):
    """ConvModel.forward: NCHW in -> NCHW out, one fused pallas_call."""
    N, Cin, H, W = x_nchw.shape
    num = len(prepared)
    Cmid = prepared[0][0].shape[-1] // W

    if imgs_per_step is None:
        imgs_per_step = _images_per_step(N)
    G = imgs_per_step
    assert N % G == 0, (N, G)

    T = 8                                  # top margin: interiors sublane-aligned
    P = ((H + 4 + 7) // 8) * 8             # per-image row block (halos + align)
    rows = T + G * P + 2                   # +2 rows for the kh=4 read window

    # Tiny one-time layout glue: NCHW -> flattened-NHWC rows (N, H, W*Cin).
    x_flat = jnp.transpose(x_nchw, (0, 2, 3, 1)).reshape(N, H, W * Cin)
    flat_params = [a for blk in prepared for a in blk]

    in_specs = [pl.BlockSpec((G, H, W * Cin), lambda n: (n, 0, 0))]
    for (t1, bb1, t2, bb2) in prepared:    # grid-invariant weights / biases
        in_specs += [
            pl.BlockSpec(t1.shape, lambda n: (0, 0, 0)),
            pl.BlockSpec(bb1.shape, lambda n: (0, 0)),
            pl.BlockSpec(t2.shape, lambda n: (0, 0, 0)),
            pl.BlockSpec(bb2.shape, lambda n: (0, 0)),
        ]

    # Advisory cost hint for XLA scheduling around this microseconds-scale call.
    grid_steps = N // G
    flops = num * 2 * 5 * 2 * (G * P) * (W * Cin) * (W * Cmid) * grid_steps
    weight_bytes = sum(int(a.size) * a.dtype.itemsize for a in flat_params)
    act_bytes = 2 * N * H * W * Cin * 4
    cost = pl.CostEstimate(flops=flops, transcendentals=0,
                           bytes_accessed=weight_bytes * grid_steps + act_bytes)

    kernel = functools.partial(_conv_model_kernel, num=num, H=H, W=W,
                               imgs=G, P=P, T=T)
    out = pl.pallas_call(
        kernel,
        out_shape=jax.ShapeDtypeStruct((N, H, W * Cin), jnp.float32),
        grid=(grid_steps,),
        in_specs=in_specs,
        out_specs=pl.BlockSpec((G, H, W * Cin), lambda n: (n, 0, 0)),
        scratch_shapes=[
            pltpu.VMEM((rows, W * Cin), jnp.float32),    # padded act (ins ch)
            pltpu.VMEM((rows, W * Cmid), jnp.float32),   # padded act (mid ch)
        ],
        compiler_params=pltpu.CompilerParams(
            dimension_semantics=("parallel",)),
        cost_estimate=cost,
    )(x_flat, *flat_params)

    # Flattened-NHWC rows -> NCHW (single tiny XLA transpose of the result).
    return jnp.transpose(out.reshape(N, H, W, Cin), (0, 3, 1, 2))


# -----------------------------------------------------------------------------
# References (pure JAX) + param init
# -----------------------------------------------------------------------------
def conv_model_reference(x_nchw, params):
    """True f32 module semantics (PyTorch-equivalent)."""
    x = x_nchw
    for (w1, b1, w2, b2) in params:
        x = lax.conv_general_dilated(
            x, w1, (1, 1), ((2, 2), (2, 2)),
            dimension_numbers=("NCHW", "OIHW", "NCHW"),
            precision=lax.Precision.HIGHEST) + b1[None, :, None, None]
        x = lax.conv_general_dilated(
            x, w2, (1, 1), ((2, 2), (2, 2)),
            dimension_numbers=("NCHW", "OIHW", "NCHW"),
            precision=lax.Precision.HIGHEST) + b2[None, :, None, None]
        x = jnp.where(x >= 0, x, 0.01 * x)
    return x


def conv_model_reference_bf16w(x_nchw, params):
    """Numerics-matched reference: bf16 conv inputs/weights, f32 accumulation,
    f32 bias/LeakyReLU — exactly the arithmetic the kernel performs."""
    x = x_nchw
    for (w1, b1, w2, b2) in params:
        x = lax.conv_general_dilated(
            x.astype(jnp.bfloat16), w1.astype(jnp.bfloat16), (1, 1),
            ((2, 2), (2, 2)), dimension_numbers=("NCHW", "OIHW", "NCHW"),
            preferred_element_type=jnp.float32) + b1[None, :, None, None]
        x = lax.conv_general_dilated(
            x.astype(jnp.bfloat16), w2.astype(jnp.bfloat16), (1, 1),
            ((2, 2), (2, 2)), dimension_numbers=("NCHW", "OIHW", "NCHW"),
            preferred_element_type=jnp.float32) + b2[None, :, None, None]
        x = jnp.where(x >= 0, x, 0.01 * x)
    return x


def init_conv_model_params(key, num, ins_channels, middle_channels):
    """Deterministic params matching nn.Conv2d shapes (OIHW w, (O,) b)."""
    params = []
    for _ in range(num):
        key, k1, k2, k3, k4 = jax.random.split(key, 5)
        fan_in1 = ins_channels * 5 * 5
        bound1 = 1.0 / jnp.sqrt(fan_in1)
        w1 = jax.random.uniform(k1, (middle_channels, ins_channels, 5, 5),
                                jnp.float32, -bound1, bound1)
        b1 = jax.random.uniform(k2, (middle_channels,), jnp.float32,
                                -bound1, bound1)
        fan_in2 = middle_channels * 5 * 5
        bound2 = 1.0 / jnp.sqrt(fan_in2)
        w2 = jax.random.uniform(k3, (ins_channels, middle_channels, 5, 5),
                                jnp.float32, -bound2, bound2)
        b2 = jax.random.uniform(k4, (ins_channels,), jnp.float32,
                                -bound2, bound2)
        params.append((w1, b1, w2, b2))
    return params


if __name__ == "__main__":
    # ConvModel(dims=16, num=2, ins_channels=4, middle_channels=8)
    num = 2
    ins_channels = 4
    middle_channels = 8
    batch = 2
    spatial = 16

    key = jax.random.PRNGKey(0)
    key, xk = jax.random.split(key)
    x = jax.random.normal(xk, (batch, ins_channels, spatial, spatial),
                          jnp.float32)
    params = init_conv_model_params(key, num, ins_channels, middle_channels)

    # One-time preprocessing (would be done at model-load time).
    prepared = prepare_params(params, spatial)

    fwd = jax.jit(conv_model_forward)
    out = jax.block_until_ready(fwd(x, prepared))
    assert out.shape == (batch, ins_channels, spatial, spatial), out.shape

    # Strict check vs. a numerics-matched reference (bf16 weights/inputs,
    # f32 accumulation): validates the fused-kernel math itself.
    ref_bf16 = jax.block_until_ready(conv_model_reference_bf16w(x, params))
    err_kernel = float(jnp.max(jnp.abs(out - ref_bf16)))
    assert jnp.allclose(out, ref_bf16, atol=2e-3, rtol=2e-3), err_kernel

    # Sanity bound vs. the true f32 module semantics: the only divergence is
    # the bf16 weight/activation quantization at the MXU (f32 accumulation).
    ref_f32 = jax.block_until_ready(conv_model_reference(x, params))
    err_quant = float(jnp.max(jnp.abs(out - ref_f32)))
    assert jnp.allclose(out, ref_f32, atol=3e-2, rtol=3e-2), err_quant

    print("KERNEL_OK")
</pallas_src>

<mosaic_0001>
module attributes {stable_mosaic.version = 11 : i64} {
  func.func @_conv_model_kernel(%arg0: i32, %arg1: memref<2x16x64xf32, #tpu.memory_space<vmem>>, %arg2: memref<5x64x128xbf16, #tpu.memory_space<vmem>>, %arg3: memref<1x128xf32, #tpu.memory_space<vmem>>, %arg4: memref<5x128x64xbf16, #tpu.memory_space<vmem>>, %arg5: memref<1x64xf32, #tpu.memory_space<vmem>>, %arg6: memref<5x64x128xbf16, #tpu.memory_space<vmem>>, %arg7: memref<1x128xf32, #tpu.memory_space<vmem>>, %arg8: memref<5x128x64xbf16, #tpu.memory_space<vmem>>, %arg9: memref<1x64xf32, #tpu.memory_space<vmem>>, %arg10: memref<2x16x64xf32, #tpu.memory_space<vmem>>, %arg11: memref<58x64xf32, #tpu.memory_space<vmem>>, %arg12: memref<58x128xf32, #tpu.memory_space<vmem>>) attributes {dimension_semantics = [#tpu.dimension_semantics<parallel>], iteration_bounds = array<i64: 1>, scalar_prefetch = 0 : i64, scratch_operands = 2 : i64, tpu.core_type = #tpu.core_type<tc>, window_params = [{transform_indices = @transform_0, window_bounds = array<i64: 2, 16, 64>}, {pipeline_mode = #tpu.pipeline_mode<synchronous>, transform_indices = @transform_1, window_bounds = array<i64: 5, 64, 128>}, {pipeline_mode = #tpu.pipeline_mode<synchronous>, transform_indices = @transform_2, window_bounds = array<i64: 1, 128>}, {pipeline_mode = #tpu.pipeline_mode<synchronous>, transform_indices = @transform_3, window_bounds = array<i64: 5, 128, 64>}, {pipeline_mode = #tpu.pipeline_mode<synchronous>, transform_indices = @transform_4, window_bounds = array<i64: 1, 64>}, {pipeline_mode = #tpu.pipeline_mode<synchronous>, transform_indices = @transform_5, window_bounds = array<i64: 5, 64, 128>}, {pipeline_mode = #tpu.pipeline_mode<synchronous>, transform_indices = @transform_6, window_bounds = array<i64: 1, 128>}, {pipeline_mode = #tpu.pipeline_mode<synchronous>, transform_indices = @transform_7, window_bounds = array<i64: 5, 128, 64>}, {pipeline_mode = #tpu.pipeline_mode<synchronous>, transform_indices = @transform_8, window_bounds = array<i64: 1, 64>}, {transform_indices = @transform_9, window_bounds = array<i64: 2, 16, 64>}]} {
    %cst = arith.constant 0.000000e+00 : f32
    %0 = vector.broadcast %cst : f32 to vector<2x64xf32>
    %c6 = arith.constant 6 : index
    %c0 = arith.constant 0 : index
    %1 = vector.load %arg11[%c6, %c0] : memref<58x64xf32, #tpu.memory_space<vmem>>, vector<2x64xf32>
    tpu.vector_store %arg11[%c6, %c0], %0 {strides = array<i32>} : memref<58x64xf32, #tpu.memory_space<vmem>>, vector<2x64xf32>,
    %c24 = arith.constant 24 : index
    %c0_0 = arith.constant 0 : index
    %2 = vector.load %arg11[%c24, %c0_0] : memref<58x64xf32, #tpu.memory_space<vmem>>, vector<2x64xf32>
    tpu.vector_store %arg11[%c24, %c0_0], %0 {strides = array<i32>} : memref<58x64xf32, #tpu.memory_space<vmem>>, vector<2x64xf32>,
    %cst_1 = arith.constant 0.000000e+00 : f32
    %3 = vector.broadcast %cst_1 : f32 to vector<2x128xf32>
    %c6_2 = arith.constant 6 : index
    %c0_3 = arith.constant 0 : index
    %4 = vector.load %arg12[%c6_2, %c0_3] : memref<58x128xf32, #tpu.memory_space<vmem>>, vector<2x128xf32>
    tpu.vector_store %arg12[%c6_2, %c0_3], %3 {strides = array<i32>} : memref<58x128xf32, #tpu.memory_space<vmem>>, vector<2x128xf32>,
    %c24_4 = arith.constant 24 : index
    %c0_5 = arith.constant 0 : index
    %5 = vector.load %arg12[%c24_4, %c0_5] : memref<58x128xf32, #tpu.memory_space<vmem>>, vector<2x128xf32>
    tpu.vector_store %arg12[%c24_4, %c0_5], %3 {strides = array<i32>} : memref<58x128xf32, #tpu.memory_space<vmem>>, vector<2x128xf32>,
    %cst_6 = arith.constant 0.000000e+00 : f32
    %6 = vector.broadcast %cst_6 : f32 to vector<2x64xf32>
    %c30 = arith.constant 30 : index
    %c0_7 = arith.constant 0 : index
    %7 = vector.load %arg11[%c30, %c0_7] : memref<58x64xf32, #tpu.memory_space<vmem>>, vector<2x64xf32>
    tpu.vector_store %arg11[%c30, %c0_7], %6 {strides = array<i32>} : memref<58x64xf32, #tpu.memory_space<vmem>>, vector<2x64xf32>,
    %c48 = arith.constant 48 : index
    %c0_8 = arith.constant 0 : index
    %8 = vector.load %arg11[%c48, %c0_8] : memref<58x64xf32, #tpu.memory_space<vmem>>, vector<2x64xf32>
    tpu.vector_store %arg11[%c48, %c0_8], %6 {strides = array<i32>} : memref<58x64xf32, #tpu.memory_space<vmem>>, vector<2x64xf32>,
    %cst_9 = arith.constant 0.000000e+00 : f32
    %9 = vector.broadcast %cst_9 : f32 to vector<2x128xf32>
    %c30_10 = arith.constant 30 : index
    %c0_11 = arith.constant 0 : index
    %10 = vector.load %arg12[%c30_10, %c0_11] : memref<58x128xf32, #tpu.memory_space<vmem>>, vector<2x128xf32>
    tpu.vector_store %arg12[%c30_10, %c0_11], %9 {strides = array<i32>} : memref<58x128xf32, #tpu.memory_space<vmem>>, vector<2x128xf32>,
    %c48_12 = arith.constant 48 : index
    %c0_13 = arith.constant 0 : index
    %11 = vector.load %arg12[%c48_12, %c0_13] : memref<58x128xf32, #tpu.memory_space<vmem>>, vector<2x128xf32>
    tpu.vector_store %arg12[%c48_12, %c0_13], %9 {strides = array<i32>} : memref<58x128xf32, #tpu.memory_space<vmem>>, vector<2x128xf32>,
    %c0_14 = arith.constant 0 : index
    %c0_15 = arith.constant 0 : index
    %c0_16 = arith.constant 0 : index
    %12 = vector.load %arg1[%c0_14, %c0_15, %c0_16] : memref<2x16x64xf32, #tpu.memory_space<vmem>>, vector<1x16x64xf32>
    %13 = vector.shape_cast %12 : vector<1x16x64xf32> to vector<16x64xf32>
    %c8 = arith.constant 8 : index
    %c0_17 = arith.constant 0 : index
    %14 = vector.load %arg11[%c8, %c0_17] : memref<58x64xf32, #tpu.memory_space<vmem>>, vector<16x64xf32>
    tpu.vector_store %arg11[%c8, %c0_17], %13 {strides = array<i32>} : memref<58x64xf32, #tpu.memory_space<vmem>>, vector<16x64xf32>,
    %c1 = arith.constant 1 : index
    %c0_18 = arith.constant 0 : index
    %c0_19 = arith.constant 0 : index
    %15 = vector.load %arg1[%c1, %c0_18, %c0_19] : memref<2x16x64xf32, #tpu.memory_space<vmem>>, vector<1x16x64xf32>
    %16 = vector.shape_cast %15 : vector<1x16x64xf32> to vector<16x64xf32>
    %c32 = arith.constant 32 : index
    %c0_20 = arith.constant 0 : index
    %17 = vector.load %arg11[%c32, %c0_20] : memref<58x64xf32, #tpu.memory_space<vmem>>, vector<16x64xf32>
    tpu.vector_store %arg11[%c32, %c0_20], %16 {strides = array<i32>} : memref<58x64xf32, #tpu.memory_space<vmem>>, vector<16x64xf32>,
    %c6_21 = arith.constant 6 : index
    %c0_22 = arith.constant 0 : index
    %18 = vector.load %arg11[%c6_21, %c0_22] : memref<58x64xf32, #tpu.memory_space<vmem>>, vector<48x64xf32>
    %19 = arith.truncf %18 : vector<48x64xf32> to vector<48x64xbf16>
    %c0_23 = arith.constant 0 : index
    %c0_24 = arith.constant 0 : index
    %c0_25 = arith.constant 0 : index
    %20 = vector.load %arg2[%c0_23, %c0_24, %c0_25] : memref<5x64x128xbf16, #tpu.memory_space<vmem>>, vector<1x64x128xbf16>
    %21 = vector.shape_cast %20 : vector<1x64x128xbf16> to vector<64x128xbf16>
    %cst_26 = arith.constant dense<0.000000e+00> : vector<48x128xf32>
    %22 = tpu.matmul %19, %21, %cst_26 {dimension_numbers = #tpu.dot_dimension_numbers<[1], [0], [0], [1], [0, 0, 1, 1], [], []>} : vector<48x64xbf16>, vector<64x128xbf16>, vector<48x128xf32> -> vector<48x128xf32>
    %c7 = arith.constant 7 : index
    %c0_27 = arith.constant 0 : index
    %23 = vector.load %arg11[%c7, %c0_27] : memref<58x64xf32, #tpu.memory_space<vmem>>, vector<48x64xf32>
    %24 = arith.truncf %23 : vector<48x64xf32> to vector<48x64xbf16>
    %c1_28 = arith.constant 1 : index
    %c0_29 = arith.constant 0 : index
    %c0_30 = arith.constant 0 : index
    %25 = vector.load %arg2[%c1_28, %c0_29, %c0_30] : memref<5x64x128xbf16, #tpu.memory_space<vmem>>, vector<1x64x128xbf16>
    %26 = vector.shape_cast %25 : vector<1x64x128xbf16> to vector<64x128xbf16>
    %cst_31 = arith.constant dense<0.000000e+00> : vector<48x128xf32>
    %27 = tpu.matmul %24, %26, %cst_31 {dimension_numbers = #tpu.dot_dimension_numbers<[1], [0], [0], [1], [0, 0, 1, 1], [], []>} : vector<48x64xbf16>, vector<64x128xbf16>, vector<48x128xf32> -> vector<48x128xf32>
    %28 = arith.addf %22, %27 : vector<48x128xf32>
    %c8_32 = arith.constant 8 : index
    %c0_33 = arith.constant 0 : index
    %29 = vector.load %arg11[%c8_32, %c0_33] : memref<58x64xf32, #tpu.memory_space<vmem>>, vector<48x64xf32>
    %30 = arith.truncf %29 : vector<48x64xf32> to vector<48x64xbf16>
    %c2 = arith.constant 2 : index
    %c0_34 = arith.constant 0 : index
    %c0_35 = arith.constant 0 : index
    %31 = vector.load %arg2[%c2, %c0_34, %c0_35] : memref<5x64x128xbf16, #tpu.memory_space<vmem>>, vector<1x64x128xbf16>
    %32 = vector.shape_cast %31 : vector<1x64x128xbf16> to vector<64x128xbf16>
    %cst_36 = arith.constant dense<0.000000e+00> : vector<48x128xf32>
    %33 = tpu.matmul %30, %32, %cst_36 {dimension_numbers = #tpu.dot_dimension_numbers<[1], [0], [0], [1], [0, 0, 1, 1], [], []>} : vector<48x64xbf16>, vector<64x128xbf16>, vector<48x128xf32> -> vector<48x128xf32>
    %34 = arith.addf %28, %33 : vector<48x128xf32>
    %c9 = arith.constant 9 : index
    %c0_37 = arith.constant 0 : index
    %35 = vector.load %arg11[%c9, %c0_37] : memref<58x64xf32, #tpu.memory_space<vmem>>, vector<48x64xf32>
    %36 = arith.truncf %35 : vector<48x64xf32> to vector<48x64xbf16>
    %c3 = arith.constant 3 : index
    %c0_38 = arith.constant 0 : index
    %c0_39 = arith.constant 0 : index
    %37 = vector.load %arg2[%c3, %c0_38, %c0_39] : memref<5x64x128xbf16, #tpu.memory_space<vmem>>, vector<1x64x128xbf16>
    %38 = vector.shape_cast %37 : vector<1x64x128xbf16> to vector<64x128xbf16>
    %cst_40 = arith.constant dense<0.000000e+00> : vector<48x128xf32>
    %39 = tpu.matmul %36, %38, %cst_40 {dimension_numbers = #tpu.dot_dimension_numbers<[1], [0], [0], [1], [0, 0, 1, 1], [], []>} : vector<48x64xbf16>, vector<64x128xbf16>, vector<48x128xf32> -> vector<48x128xf32>
    %40 = arith.addf %34, %39 : vector<48x128xf32>
    %c10 = arith.constant 10 : index
    %c0_41 = arith.constant 0 : index
    %41 = vector.load %arg11[%c10, %c0_41] : memref<58x64xf32, #tpu.memory_space<vmem>>, vector<48x64xf32>
    %42 = arith.truncf %41 : vector<48x64xf32> to vector<48x64xbf16>
    %c4 = arith.constant 4 : index
    %c0_42 = arith.constant 0 : index
    %c0_43 = arith.constant 0 : index
    %43 = vector.load %arg2[%c4, %c0_42, %c0_43] : memref<5x64x128xbf16, #tpu.memory_space<vmem>>, vector<1x64x128xbf16>
    %44 = vector.shape_cast %43 : vector<1x64x128xbf16> to vector<64x128xbf16>
    %cst_44 = arith.constant dense<0.000000e+00> : vector<48x128xf32>
    %45 = tpu.matmul %42, %44, %cst_44 {dimension_numbers = #tpu.dot_dimension_numbers<[1], [0], [0], [1], [0, 0, 1, 1], [], []>} : vector<48x64xbf16>, vector<64x128xbf16>, vector<48x128xf32> -> vector<48x128xf32>
    %46 = arith.addf %40, %45 : vector<48x128xf32>
    %c0_45 = arith.constant 0 : index
    %c0_46 = arith.constant 0 : index
    %47 = vector.load %arg3[%c0_45, %c0_46] : memref<1x128xf32, #tpu.memory_space<vmem>>, vector<1x128xf32>
    %48 = vector.broadcast %47 : vector<1x128xf32> to vector<48x128xf32>
    %49 = arith.addf %46, %48 : vector<48x128xf32>
    %50 = vector.extract_strided_slice %49 {offsets = [0, 0], sizes = [16, 128], strides = [1, 1]} : vector<48x128xf32> to vector<16x128xf32>
    %c8_47 = arith.constant 8 : index
    %c0_48 = arith.constant 0 : index
    %51 = vector.load %arg12[%c8_47, %c0_48] : memref<58x128xf32, #tpu.memory_space<vmem>>, vector<16x128xf32>
    tpu.vector_store %arg12[%c8_47, %c0_48], %50 {strides = array<i32>} : memref<58x128xf32, #tpu.memory_space<vmem>>, vector<16x128xf32>,
    %52 = vector.extract_strided_slice %49 {offsets = [24, 0], sizes = [16, 128], strides = [1, 1]} : vector<48x128xf32> to vector<16x128xf32>
    %c32_49 = arith.constant 32 : index
    %c0_50 = arith.constant 0 : index
    %53 = vector.load %arg12[%c32_49, %c0_50] : memref<58x128xf32, #tpu.memory_space<vmem>>, vector<16x128xf32>
    tpu.vector_store %arg12[%c32_49, %c0_50], %52 {strides = array<i32>} : memref<58x128xf32, #tpu.memory_space<vmem>>, vector<16x128xf32>,
    %c6_51 = arith.constant 6 : index
    %c0_52 = arith.constant 0 : index
    %54 = vector.load %arg12[%c6_51, %c0_52] : memref<58x128xf32, #tpu.memory_space<vmem>>, vector<48x128xf32>
    %55 = arith.truncf %54 : vector<48x128xf32> to vector<48x128xbf16>
    %c0_53 = arith.constant 0 : index
    %c0_54 = arith.constant 0 : index
    %c0_55 = arith.constant 0 : index
    %56 = vector.load %arg4[%c0_53, %c0_54, %c0_55] : memref<5x128x64xbf16, #tpu.memory_space<vmem>>, vector<1x128x64xbf16>
    %57 = vector.shape_cast %56 : vector<1x128x64xbf16> to vector<128x64xbf16>
    %cst_56 = arith.constant dense<0.000000e+00> : vector<48x64xf32>
    %58 = tpu.matmul %55, %57, %cst_56 {dimension_numbers = #tpu.dot_dimension_numbers<[1], [0], [0], [1], [0, 0, 1, 1], [], []>} : vector<48x128xbf16>, vector<128x64xbf16>, vector<48x64xf32> -> vector<48x64xf32>
    %c7_57 = arith.constant 7 : index
    %c0_58 = arith.constant 0 : index
    %59 = vector.load %arg12[%c7_57, %c0_58] : memref<58x128xf32, #tpu.memory_space<vmem>>, vector<48x128xf32>
    %60 = arith.truncf %59 : vector<48x128xf32> to vector<48x128xbf16>
    %c1_59 = arith.constant 1 : index
    %c0_60 = arith.constant 0 : index
    %c0_61 = arith.constant 0 : index
    %61 = vector.load %arg4[%c1_59, %c0_60, %c0_61] : memref<5x128x64xbf16, #tpu.memory_space<vmem>>, vector<1x128x64xbf16>
    %62 = vector.shape_cast %61 : vector<1x128x64xbf16> to vector<128x64xbf16>
    %cst_62 = arith.constant dense<0.000000e+00> : vector<48x64xf32>
    %63 = tpu.matmul %60, %62, %cst_62 {dimension_numbers = #tpu.dot_dimension_numbers<[1], [0], [0], [1], [0, 0, 1, 1], [], []>} : vector<48x128xbf16>, vector<128x64xbf16>, vector<48x64xf32> -> vector<48x64xf32>
    %64 = arith.addf %58, %63 : vector<48x64xf32>
    %c8_63 = arith.constant 8 : index
    %c0_64 = arith.constant 0 : index
    %65 = vector.load %arg12[%c8_63, %c0_64] : memref<58x128xf32, #tpu.memory_space<vmem>>, vector<48x128xf32>
    %66 = arith.truncf %65 : vector<48x128xf32> to vector<48x128xbf16>
    %c2_65 = arith.constant 2 : index
    %c0_66 = arith.constant 0 : index
    %c0_67 = arith.constant 0 : index
    %67 = vector.load %arg4[%c2_65, %c0_66, %c0_67] : memref<5x128x64xbf16, #tpu.memory_space<vmem>>, vector<1x128x64xbf16>
    %68 = vector.shape_cast %67 : vector<1x128x64xbf16> to vector<128x64xbf16>
    %cst_68 = arith.constant dense<0.000000e+00> : vector<48x64xf32>
    %69 = tpu.matmul %66, %68, %cst_68 {dimension_numbers = #tpu.dot_dimension_numbers<[1], [0], [0], [1], [0, 0, 1, 1], [], []>} : vector<48x128xbf16>, vector<128x64xbf16>, vector<48x64xf32> -> vector<48x64xf32>
    %70 = arith.addf %64, %69 : vector<48x64xf32>
    %c9_69 = arith.constant 9 : index
    %c0_70 = arith.constant 0 : index
    %71 = vector.load %arg12[%c9_69, %c0_70] : memref<58x128xf32, #tpu.memory_space<vmem>>, vector<48x128xf32>
    %72 = arith.truncf %71 : vector<48x128xf32> to vector<48x128xbf16>
    %c3_71 = arith.constant 3 : index
    %c0_72 = arith.constant 0 : index
    %c0_73 = arith.constant 0 : index
    %73 = vector.load %arg4[%c3_71, %c0_72, %c0_73] : memref<5x128x64xbf16, #tpu.memory_space<vmem>>, vector<1x128x64xbf16>
    %74 = vector.shape_cast %73 : vector<1x128x64xbf16> to vector<128x64xbf16>
    %cst_74 = arith.constant dense<0.000000e+00> : vector<48x64xf32>
    %75 = tpu.matmul %72, %74, %cst_74 {dimension_numbers = #tpu.dot_dimension_numbers<[1], [0], [0], [1], [0, 0, 1, 1], [], []>} : vector<48x128xbf16>, vector<128x64xbf16>, vector<48x64xf32> -> vector<48x64xf32>
    %76 = arith.addf %70, %75 : vector<48x64xf32>
    %c10_75 = arith.constant 10 : index
    %c0_76 = arith.constant 0 : index
    %77 = vector.load %arg12[%c10_75, %c0_76] : memref<58x128xf32, #tpu.memory_space<vmem>>, vector<48x128xf32>
    %78 = arith.truncf %77 : vector<48x128xf32> to vector<48x128xbf16>
    %c4_77 = arith.constant 4 : index
    %c0_78 = arith.constant 0 : index
    %c0_79 = arith.constant 0 : index
    %79 = vector.load %arg4[%c4_77, %c0_78, %c0_79] : memref<5x128x64xbf16, #tpu.memory_space<vmem>>, vector<1x128x64xbf16>
    %80 = vector.shape_cast %79 : vector<1x128x64xbf16> to vector<128x64xbf16>
    %cst_80 = arith.constant dense<0.000000e+00> : vector<48x64xf32>
    %81 = tpu.matmul %78, %80, %cst_80 {dimension_numbers = #tpu.dot_dimension_numbers<[1], [0], [0], [1], [0, 0, 1, 1], [], []>} : vector<48x128xbf16>, vector<128x64xbf16>, vector<48x64xf32> -> vector<48x64xf32>
    %82 = arith.addf %76, %81 : vector<48x64xf32>
    %c0_81 = arith.constant 0 : index
    %c0_82 = arith.constant 0 : index
    %83 = vector.load %arg5[%c0_81, %c0_82] : memref<1x64xf32, #tpu.memory_space<vmem>>, vector<1x64xf32>
    %84 = vector.broadcast %83 : vector<1x64xf32> to vector<48x64xf32>
    %85 = arith.addf %82, %84 : vector<48x64xf32>
    %cst_83 = arith.constant 0.00999999977 : f32
    %86 = vector.broadcast %cst_83 : f32 to vector<48x64xf32>
    %87 = arith.mulf %86, %85 : vector<48x64xf32>
    %88 = arith.maximumf %85, %87 : vector<48x64xf32>
    %89 = vector.extract_strided_slice %88 {offsets = [0, 0], sizes = [16, 64], strides = [1, 1]} : vector<48x64xf32> to vector<16x64xf32>
    %c8_84 = arith.constant 8 : index
    %c0_85 = arith.constant 0 : index
    %90 = vector.load %arg11[%c8_84, %c0_85] : memref<58x64xf32, #tpu.memory_space<vmem>>, vector<16x64xf32>
    tpu.vector_store %arg11[%c8_84, %c0_85], %89 {strides = array<i32>} : memref<58x64xf32, #tpu.memory_space<vmem>>, vector<16x64xf32>,
    %91 = vector.extract_strided_slice %88 {offsets = [24, 0], sizes = [16, 64], strides = [1, 1]} : vector<48x64xf32> to vector<16x64xf32>
    %c32_86 = arith.constant 32 : index
    %c0_87 = arith.constant 0 : index
    %92 = vector.load %arg11[%c32_86, %c0_87] : memref<58x64xf32, #tpu.memory_space<vmem>>, vector<16x64xf32>
    tpu.vector_store %arg11[%c32_86, %c0_87], %91 {strides = array<i32>} : memref<58x64xf32, #tpu.memory_space<vmem>>, vector<16x64xf32>,
    %c6_88 = arith.constant 6 : index
    %c0_89 = arith.constant 0 : index
    %93 = vector.load %arg11[%c6_88, %c0_89] : memref<58x64xf32, #tpu.memory_space<vmem>>, vector<48x64xf32>
    %94 = arith.truncf %93 : vector<48x64xf32> to vector<48x64xbf16>
    %c0_90 = arith.constant 0 : index
    %c0_91 = arith.constant 0 : index
    %c0_92 = arith.constant 0 : index
    %95 = vector.load %arg6[%c0_90, %c0_91, %c0_92] : memref<5x64x128xbf16, #tpu.memory_space<vmem>>, vector<1x64x128xbf16>
    %96 = vector.shape_cast %95 : vector<1x64x128xbf16> to vector<64x128xbf16>
    %cst_93 = arith.constant dense<0.000000e+00> : vector<48x128xf32>
    %97 = tpu.matmul %94, %96, %cst_93 {dimension_numbers = #tpu.dot_dimension_numbers<[1], [0], [0], [1], [0, 0, 1, 1], [], []>} : vector<48x64xbf16>, vector<64x128xbf16>, vector<48x128xf32> -> vector<48x128xf32>
    %c7_94 = arith.constant 7 : index
    %c0_95 = arith.constant 0 : index
    %98 = vector.load %arg11[%c7_94, %c0_95] : memref<58x64xf32, #tpu.memory_space<vmem>>, vector<48x64xf32>
    %99 = arith.truncf %98 : vector<48x64xf32> to vector<48x64xbf16>
    %c1_96 = arith.constant 1 : index
    %c0_97 = arith.constant 0 : index
    %c0_98 = arith.constant 0 : index
    %100 = vector.load %arg6[%c1_96, %c0_97, %c0_98] : memref<5x64x128xbf16, #tpu.memory_space<vmem>>, vector<1x64x128xbf16>
    %101 = vector.shape_cast %100 : vector<1x64x128xbf16> to vector<64x128xbf16>
    %cst_99 = arith.constant dense<0.000000e+00> : vector<48x128xf32>
    %102 = tpu.matmul %99, %101, %cst_99 {dimension_numbers = #tpu.dot_dimension_numbers<[1], [0], [0], [1], [0, 0, 1, 1], [], []>} : vector<48x64xbf16>, vector<64x128xbf16>, vector<48x128xf32> -> vector<48x128xf32>
    %103 = arith.addf %97, %102 : vector<48x128xf32>
    %c8_100 = arith.constant 8 : index
    %c0_101 = arith.constant 0 : index
    %104 = vector.load %arg11[%c8_100, %c0_101] : memref<58x64xf32, #tpu.memory_space<vmem>>, vector<48x64xf32>
    %105 = arith.truncf %104 : vector<48x64xf32> to vector<48x64xbf16>
    %c2_102 = arith.constant 2 : index
    %c0_103 = arith.constant 0 : index
    %c0_104 = arith.constant 0 : index
    %106 = vector.load %arg6[%c2_102, %c0_103, %c0_104] : memref<5x64x128xbf16, #tpu.memory_space<vmem>>, vector<1x64x128xbf16>
    %107 = vector.shape_cast %106 : vector<1x64x128xbf16> to vector<64x128xbf16>
    %cst_105 = arith.constant dense<0.000000e+00> : vector<48x128xf32>
    %108 = tpu.matmul %105, %107, %cst_105 {dimension_numbers = #tpu.dot_dimension_numbers<[1], [0], [0], [1], [0, 0, 1, 1], [], []>} : vector<48x64xbf16>, vector<64x128xbf16>, vector<48x128xf32> -> vector<48x128xf32>
    %109 = arith.addf %103, %108 : vector<48x128xf32>
    %c9_106 = arith.constant 9 : index
    %c0_107 = arith.constant 0 : index
    %110 = vector.load %arg11[%c9_106, %c0_107] : memref<58x64xf32, #tpu.memory_space<vmem>>, vector<48x64xf32>
    %111 = arith.truncf %110 : vector<48x64xf32> to vector<48x64xbf16>
    %c3_108 = arith.constant 3 : index
    %c0_109 = arith.constant 0 : index
    %c0_110 = arith.constant 0 : index
    %112 = vector.load %arg6[%c3_108, %c0_109, %c0_110] : memref<5x64x128xbf16, #tpu.memory_space<vmem>>, vector<1x64x128xbf16>
    %113 = vector.shape_cast %112 : vector<1x64x128xbf16> to vector<64x128xbf16>
    %cst_111 = arith.constant dense<0.000000e+00> : vector<48x128xf32>
    %114 = tpu.matmul %111, %113, %cst_111 {dimension_numbers = #tpu.dot_dimension_numbers<[1], [0], [0], [1], [0, 0, 1, 1], [], []>} : vector<48x64xbf16>, vector<64x128xbf16>, vector<48x128xf32> -> vector<48x128xf32>
    %115 = arith.addf %109, %114 : vector<48x128xf32>
    %c10_112 = arith.constant 10 : index
    %c0_113 = arith.constant 0 : index
    %116 = vector.load %arg11[%c10_112, %c0_113] : memref<58x64xf32, #tpu.memory_space<vmem>>, vector<48x64xf32>
    %117 = arith.truncf %116 : vector<48x64xf32> to vector<48x64xbf16>
    %c4_114 = arith.constant 4 : index
    %c0_115 = arith.constant 0 : index
    %c0_116 = arith.constant 0 : index
    %118 = vector.load %arg6[%c4_114, %c0_115, %c0_116] : memref<5x64x128xbf16, #tpu.memory_space<vmem>>, vector<1x64x128xbf16>
    %119 = vector.shape_cast %118 : vector<1x64x128xbf16> to vector<64x128xbf16>
    %cst_117 = arith.constant dense<0.000000e+00> : vector<48x128xf32>
    %120 = tpu.matmul %117, %119, %cst_117 {dimension_numbers = #tpu.dot_dimension_numbers<[1], [0], [0], [1], [0, 0, 1, 1], [], []>} : vector<48x64xbf16>, vector<64x128xbf16>, vector<48x128xf32> -> vector<48x128xf32>
    %121 = arith.addf %115, %120 : vector<48x128xf32>
    %c0_118 = arith.constant 0 : index
    %c0_119 = arith.constant 0 : index
    %122 = vector.load %arg7[%c0_118, %c0_119] : memref<1x128xf32, #tpu.memory_space<vmem>>, vector<1x128xf32>
    %123 = vector.broadcast %122 : vector<1x128xf32> to vector<48x128xf32>
    %124 = arith.addf %121, %123 : vector<48x128xf32>
    %125 = vector.extract_strided_slice %124 {offsets = [0, 0], sizes = [16, 128], strides = [1, 1]} : vector<48x128xf32> to vector<16x128xf32>
    %c8_120 = arith.constant 8 : index
    %c0_121 = arith.constant 0 : index
    %126 = vector.load %arg12[%c8_120, %c0_121] : memref<58x128xf32, #tpu.memory_space<vmem>>, vector<16x128xf32>
    tpu.vector_store %arg12[%c8_120, %c0_121], %125 {strides = array<i32>} : memref<58x128xf32, #tpu.memory_space<vmem>>, vector<16x128xf32>,
    %127 = vector.extract_strided_slice %124 {offsets = [24, 0], sizes = [16, 128], strides = [1, 1]} : vector<48x128xf32> to vector<16x128xf32>
    %c32_122 = arith.constant 32 : index
    %c0_123 = arith.constant 0 : index
    %128 = vector.load %arg12[%c32_122, %c0_123] : memref<58x128xf32, #tpu.memory_space<vmem>>, vector<16x128xf32>
    tpu.vector_store %arg12[%c32_122, %c0_123], %127 {strides = array<i32>} : memref<58x128xf32, #tpu.memory_space<vmem>>, vector<16x128xf32>,
    %c6_124 = arith.constant 6 : index
    %c0_125 = arith.constant 0 : index
    %129 = vector.load %arg12[%c6_124, %c0_125] : memref<58x128xf32, #tpu.memory_space<vmem>>, vector<48x128xf32>
    %130 = arith.truncf %129 : vector<48x128xf32> to vector<48x128xbf16>
    %c0_126 = arith.constant 0 : index
    %c0_127 = arith.constant 0 : index
    %c0_128 = arith.constant 0 : index
    %131 = vector.load %arg8[%c0_126, %c0_127, %c0_128] : memref<5x128x64xbf16, #tpu.memory_space<vmem>>, vector<1x128x64xbf16>
    %132 = vector.shape_cast %131 : vector<1x128x64xbf16> to vector<128x64xbf16>
    %cst_129 = arith.constant dense<0.000000e+00> : vector<48x64xf32>
    %133 = tpu.matmul %130, %132, %cst_129 {dimension_numbers = #tpu.dot_dimension_numbers<[1], [0], [0], [1], [0, 0, 1, 1], [], []>} : vector<48x128xbf16>, vector<128x64xbf16>, vector<48x64xf32> -> vector<48x64xf32>
    %c7_130 = arith.constant 7 : index
    %c0_131 = arith.constant 0 : index
    %134 = vector.load %arg12[%c7_130, %c0_131] : memref<58x128xf32, #tpu.memory_space<vmem>>, vector<48x128xf32>
    %135 = arith.truncf %134 : vector<48x128xf32> to vector<48x128xbf16>
    %c1_132 = arith.constant 1 : index
    %c0_133 = arith.constant 0 : index
    %c0_134 = arith.constant 0 : index
    %136 = vector.load %arg8[%c1_132, %c0_133, %c0_134] : memref<5x128x64xbf16, #tpu.memory_space<vmem>>, vector<1x128x64xbf16>
    %137 = vector.shape_cast %136 : vector<1x128x64xbf16> to vector<128x64xbf16>
    %cst_135 = arith.constant dense<0.000000e+00> : vector<48x64xf32>
    %138 = tpu.matmul %135, %137, %cst_135 {dimension_numbers = #tpu.dot_dimension_numbers<[1], [0], [0], [1], [0, 0, 1, 1], [], []>} : vector<48x128xbf16>, vector<128x64xbf16>, vector<48x64xf32> -> vector<48x64xf32>
    %139 = arith.addf %133, %138 : vector<48x64xf32>
    %c8_136 = arith.constant 8 : index
    %c0_137 = arith.constant 0 : index
    %140 = vector.load %arg12[%c8_136, %c0_137] : memref<58x128xf32, #tpu.memory_space<vmem>>, vector<48x128xf32>
    %141 = arith.truncf %140 : vector<48x128xf32> to vector<48x128xbf16>
    %c2_138 = arith.constant 2 : index
    %c0_139 = arith.constant 0 : index
    %c0_140 = arith.constant 0 : index
    %142 = vector.load %arg8[%c2_138, %c0_139, %c0_140] : memref<5x128x64xbf16, #tpu.memory_space<vmem>>, vector<1x128x64xbf16>
    %143 = vector.shape_cast %142 : vector<1x128x64xbf16> to vector<128x64xbf16>
    %cst_141 = arith.constant dense<0.000000e+00> : vector<48x64xf32>
    %144 = tpu.matmul %141, %143, %cst_141 {dimension_numbers = #tpu.dot_dimension_numbers<[1], [0], [0], [1], [0, 0, 1, 1], [], []>} : vector<48x128xbf16>, vector<128x64xbf16>, vector<48x64xf32> -> vector<48x64xf32>
    %145 = arith.addf %139, %144 : vector<48x64xf32>
    %c9_142 = arith.constant 9 : index
    %c0_143 = arith.constant 0 : index
    %146 = vector.load %arg12[%c9_142, %c0_143] : memref<58x128xf32, #tpu.memory_space<vmem>>, vector<48x128xf32>
    %147 = arith.truncf %146 : vector<48x128xf32> to vector<48x128xbf16>
    %c3_144 = arith.constant 3 : index
    %c0_145 = arith.constant 0 : index
    %c0_146 = arith.constant 0 : index
    %148 = vector.load %arg8[%c3_144, %c0_145, %c0_146] : memref<5x128x64xbf16, #tpu.memory_space<vmem>>, vector<1x128x64xbf16>
    %149 = vector.shape_cast %148 : vector<1x128x64xbf16> to vector<128x64xbf16>
    %cst_147 = arith.constant dense<0.000000e+00> : vector<48x64xf32>
    %150 = tpu.matmul %147, %149, %cst_147 {dimension_numbers = #tpu.dot_dimension_numbers<[1], [0], [0], [1], [0, 0, 1, 1], [], []>} : vector<48x128xbf16>, vector<128x64xbf16>, vector<48x64xf32> -> vector<48x64xf32>
    %151 = arith.addf %145, %150 : vector<48x64xf32>
    %c10_148 = arith.constant 10 : index
    %c0_149 = arith.constant 0 : index
    %152 = vector.load %arg12[%c10_148, %c0_149] : memref<58x128xf32, #tpu.memory_space<vmem>>, vector<48x128xf32>
    %153 = arith.truncf %152 : vector<48x128xf32> to vector<48x128xbf16>
    %c4_150 = arith.constant 4 : index
    %c0_151 = arith.constant 0 : index
    %c0_152 = arith.constant 0 : index
    %154 = vector.load %arg8[%c4_150, %c0_151, %c0_152] : memref<5x128x64xbf16, #tpu.memory_space<vmem>>, vector<1x128x64xbf16>
    %155 = vector.shape_cast %154 : vector<1x128x64xbf16> to vector<128x64xbf16>
    %cst_153 = arith.constant dense<0.000000e+00> : vector<48x64xf32>
    %156 = tpu.matmul %153, %155, %cst_153 {dimension_numbers = #tpu.dot_dimension_numbers<[1], [0], [0], [1], [0, 0, 1, 1], [], []>} : vector<48x128xbf16>, vector<128x64xbf16>, vector<48x64xf32> -> vector<48x64xf32>
    %157 = arith.addf %151, %156 : vector<48x64xf32>
    %c0_154 = arith.constant 0 : index
    %c0_155 = arith.constant 0 : index
    %158 = vector.load %arg9[%c0_154, %c0_155] : memref<1x64xf32, #tpu.memory_space<vmem>>, vector<1x64xf32>
    %159 = vector.broadcast %158 : vector<1x64xf32> to vector<48x64xf32>
    %160 = arith.addf %157, %159 : vector<48x64xf32>
    %cst_156 = arith.constant 0.00999999977 : f32
    %161 = vector.broadcast %cst_156 : f32 to vector<48x64xf32>
    %162 = arith.mulf %161, %160 : vector<48x64xf32>
    %163 = arith.maximumf %160, %162 : vector<48x64xf32>
    %164 = vector.extract_strided_slice %163 {offsets = [0, 0], sizes = [16, 64], strides = [1, 1]} : vector<48x64xf32> to vector<16x64xf32>
    %c0_157 = arith.constant 0 : index
    %c0_158 = arith.constant 0 : index
    %c0_159 = arith.constant 0 : index
    %165 = vector.load %arg10[%c0_157, %c0_158, %c0_159] : memref<2x16x64xf32, #tpu.memory_space<vmem>>, vector<1x16x64xf32>
    %166 = vector.shape_cast %165 : vector<1x16x64xf32> to vector<16x64xf32>
    %167 = vector.shape_cast %164 : vector<16x64xf32> to vector<1x16x64xf32>
    tpu.vector_store %arg10[%c0_157, %c0_158, %c0_159], %167 {strides = array<i32>} : memref<2x16x64xf32, #tpu.memory_space<vmem>>, vector<1x16x64xf32>,
    %168 = vector.extract_strided_slice %163 {offsets = [24, 0], sizes = [16, 64], strides = [1, 1]} : vector<48x64xf32> to vector<16x64xf32>
    %c1_160 = arith.constant 1 : index
    %c0_161 = arith.constant 0 : index
    %c0_162 = arith.constant 0 : index
    %169 = vector.load %arg10[%c1_160, %c0_161, %c0_162] : memref<2x16x64xf32, #tpu.memory_space<vmem>>, vector<1x16x64xf32>
    %170 = vector.shape_cast %169 : vector<1x16x64xf32> to vector<16x64xf32>
    %171 = vector.shape_cast %168 : vector<16x64xf32> to vector<1x16x64xf32>
    tpu.vector_store %arg10[%c1_160, %c0_161, %c0_162], %171 {strides = array<i32>} : memref<2x16x64xf32, #tpu.memory_space<vmem>>, vector<1x16x64xf32>,
    return
  }
  func.func @transform_0(%arg0: i32) -> (i32, i32, i32) {
    %c0_i32 = arith.constant 0 : i32
    %c0_i32_0 = arith.constant 0 : i32
    %c0_i32_1 = arith.constant 0 : i32
    return %arg0, %c0_i32, %c0_i32_0 : i32, i32, i32
  }
  func.func @transform_1(%arg0: i32) -> (i32, i32, i32) {
    %c0_i32 = arith.constant 0 : i32
    %c0_i32_0 = arith.constant 0 : i32
    %c0_i32_1 = arith.constant 0 : i32
    %c0_i32_2 = arith.constant 0 : i32
    return %c0_i32, %c0_i32_0, %c0_i32_1 : i32, i32, i32
  }
  func.func @transform_2(%arg0: i32) -> (i32, i32) {
    %c0_i32 = arith.constant 0 : i32
    %c0_i32_0 = arith.constant 0 : i32
    %c0_i32_1 = arith.constant 0 : i32
    return %c0_i32, %c0_i32_0 : i32, i32
  }
  func.func @transform_3(%arg0: i32) -> (i32, i32, i32) {
    %c0_i32 = arith.constant 0 : i32
    %c0_i32_0 = arith.constant 0 : i32
    %c0_i32_1 = arith.constant 0 : i32
    %c0_i32_2 = arith.constant 0 : i32
    return %c0_i32, %c0_i32_0, %c0_i32_1 : i32, i32, i32
  }
  func.func @transform_4(%arg0: i32) -> (i32, i32) {
    %c0_i32 = arith.constant 0 : i32
    %c0_i32_0 = arith.constant 0 : i32
    %c0_i32_1 = arith.constant 0 : i32
    return %c0_i32, %c0_i32_0 : i32, i32
  }
  func.func @transform_5(%arg0: i32) -> (i32, i32, i32) {
    %c0_i32 = arith.constant 0 : i32
    %c0_i32_0 = arith.constant 0 : i32
    %c0_i32_1 = arith.constant 0 : i32
    %c0_i32_2 = arith.constant 0 : i32
    return %c0_i32, %c0_i32_0, %c0_i32_1 : i32, i32, i32
  }
  func.func @transform_6(%arg0: i32) -> (i32, i32) {
    %c0_i32 = arith.constant 0 : i32
    %c0_i32_0 = arith.constant 0 : i32
    %c0_i32_1 = arith.constant 0 : i32
    return %c0_i32, %c0_i32_0 : i32, i32
  }
  func.func @transform_7(%arg0: i32) -> (i32, i32, i32) {
    %c0_i32 = arith.constant 0 : i32
    %c0_i32_0 = arith.constant 0 : i32
    %c0_i32_1 = arith.constant 0 : i32
    %c0_i32_2 = arith.constant 0 : i32
    return %c0_i32, %c0_i32_0, %c0_i32_1 : i32, i32, i32
  }
  func.func @transform_8(%arg0: i32) -> (i32, i32) {
    %c0_i32 = arith.constant 0 : i32
    %c0_i32_0 = arith.constant 0 : i32
    %c0_i32_1 = arith.constant 0 : i32
    return %c0_i32, %c0_i32_0 : i32, i32
  }
  func.func @transform_9(%arg0: i32) -> (i32, i32, i32) {
    %c0_i32 = arith.constant 0 : i32
    %c0_i32_0 = arith.constant 0 : i32
    %c0_i32_1 = arith.constant 0 : i32
    return %arg0, %c0_i32, %c0_i32_0 : i32, i32, i32
  }
}

</mosaic_0001>

<bundles_post_ra>
// kernel: conv_model_forward.1
= control target key start
LH: loop header
LB: loop body
LE: loop exit
PB: predicated region body
PF: predicated region fallthrough
CT: control target
= control target key end

     0   :  { %vm33_vm0 = vcmask 517120   ;;  %v3659_v0 = vmov 0.0   ;;  %vm3660_vm1 = vmmov 0   ;;  %vm44_vm2 = vcmask 523264   ;;  %s4435_s1 = inlined_call_operand.vmem [shape: bf16[5,64,128], index: 1, kind: input, shape index: {}]   ;;  %s4436_s0 = inlined_call_operand.vmem [shape: f32[2,16,64], index: 0, kind: input, shape index: {}]   ;;  %s4437_s3 = inlined_call_operand.vmem [shape: bf16[5,128,64], index: 3, kind: input, shape index: {}]   ;;  %s4438_s2 = inlined_call_operand.vmem [shape: f32[1,128], index: 2, kind: input, shape index: {}]   ;;  %s4439_s5 = inlined_call_operand.vmem [shape: bf16[5,64,128], index: 5, kind: input, shape index: {}]   ;;  %s4440_s4 = inlined_call_operand.vmem [shape: f32[1,64], index: 4, kind: input, shape index: {}]   ;;  %s4441_s7 = inlined_call_operand.vmem [shape: bf16[5,128,64], index: 7, kind: input, shape index: {}]   ;;  %s4442_s6 = inlined_call_operand.vmem [shape: f32[1,128], index: 6, kind: input, shape index: {}]   ;;  %s4443_s8 = inlined_call_operand.vmem [shape: f32[1,64], index: 8, kind: input, shape index: {}]   ;;  %s4444_s9 = inlined_call_operand.vmem [shape: f32[2,16,64], index: 9, kind: output, shape index: {}]  }
   0x1   :  { %3057 = vmatprep.subr.bf16.mxu0 %v3659_v0  ;;  %36 = vst [vmem:[#allocation3 + $0x6] sm:$0x3] %v3659_v0  ;;  %37 = vst [vmem:[#allocation3 + $0x18] sm:$0x3] %v3659_v0  ;;  %3077 = vmatprep.subr.bf16.mxu1 %v3659_v0  ;;  %v3539_v1 = vld [vmem:[%s4435_s1 + $0x20] sm:$0xff]   ;;  %v3541_v3 = vld [vmem:[%s4435_s1 + $0x28] sm:$0xff]  }
   0x2   :  { %40 = vst [vmem:[#allocation3 + $0x1e] sm:$0x3] %v3659_v0  ;;  %41 = vst [vmem:[#allocation3 + $0x30] sm:$0x3] %v3659_v0  ;;  %v3540_v2 = vld [vmem:[%s4435_s1] sm:$0xff]   ;;  %3065 = vmatprep.mubr.msk.bf16.mxu0 %vm3660_vm1, %v3659_v0  ;;  %3085 = vmatprep.mubr.msk.bf16.mxu1 %vm3660_vm1, %v3659_v0  ;;  %v3542_v4 = vld [vmem:[%s4435_s1 + $0x8] sm:$0xff]  }
   0x3   :  { %34 = vst.msk [vmem:[#allocation2 + $0x6] sm:$0x3] %vm33_vm0, %v3659_v0  ;;  %35 = vst.msk [vmem:[#allocation2 + $0x18] sm:$0x3] %vm33_vm0, %v3659_v0  ;;  %3058 = vmatpush3.bf16.msra.mxu0 %v3539_v1  ;;  %3078 = vmatpush3.bf16.msra.mxu1 %v3540_v2  ;;  %v3543_v5 = vld [vmem:[%s4435_s1 + $0x30] sm:$0xff]   ;;  %v42_v7 = vld [vmem:[%s4436_s0] sm:$0xff] }
   0x4   :  { %38 = vst.msk [vmem:[#allocation2 + $0x1e] sm:$0x3] %vm33_vm0, %v3659_v0  ;;  %39 = vst.msk [vmem:[#allocation2 + $0x30] sm:$0x3] %vm33_vm0, %v3659_v0  ;;  %3059 = vmatprep.subr.bf16.mxu0 %v3659_v0  ;;  %3079 = vmatprep.subr.bf16.mxu1 %v3659_v0  ;;  %v3544_v6 = vld [vmem:[%s4435_s1 + $0x10] sm:$0xff]   ;;  %v43_v8 = vld [vmem:[%s4436_s0 + $0x8] sm:$0xff] }
   0x5   :  { %45 = vst.msk [vmem:[#allocation2 + $0x8] sm:$0xff] %vm44_vm2, %v42_v7  ;;  %46 = vst.msk [vmem:[#allocation2 + $0x10] sm:$0xff] %vm44_vm2, %v43_v8  ;;  %v3545_v9 = vld [vmem:[%s4435_s1 + $0x38] sm:$0xff]   ;;  %v2527_v10 = vld [vmem:[%s4436_s0 + $0x10] sm:$0xff] }
   0x6   :  { %v3546_v11 = vld [vmem:[%s4435_s1 + $0x18] sm:$0xff]   ;;  %50 = vst.msk [vmem:[#allocation2 + $0x20] sm:$0xff] %vm44_vm2, %v2527_v10  ;;  %v3547_v13 = vld [vmem:[%s4435_s1 + $0x40] sm:$0xff]   ;;  %v3548_v21 = vld [vmem:[%s4435_s1 + $0x48] sm:$0xff]  }
   0x7   :  { %3060 = vmatpush3.bf16.msra.mxu0 %v3541_v3  ;;  %3080 = vmatpush3.bf16.msra.mxu1 %v3542_v4  ;;  %v2528_v12 = vld [vmem:[%s4436_s0 + $0x18] sm:$0xff]  ;;  %v3549_v20 = vld [vmem:[%s4435_s1 + $0x60] sm:$0xff]   ;;  %v3551_v26 = vld [vmem:[%s4435_s1 + $0x68] sm:$0xff]  }
   0x8   :  { %3061 = vmatprep.subr.bf16.mxu0 %v3659_v0  ;;  %3081 = vmatprep.subr.bf16.mxu1 %v3659_v0  ;;  %51 = vst.msk [vmem:[#allocation2 + $0x28] sm:$0xff] %vm44_vm2, %v2528_v12  ;;  %v3550_v29 = vld [vmem:[%s4435_s1 + $0x50] sm:$0xff]   ;;  %v3552_v32 = vld [vmem:[%s4435_s1 + $0x58] sm:$0xff]   ;;  %v3555_v44 = vld [vmem:[%s4435_s1 + $0x80] sm:$0xff]  }
   0x9   :  { %v3553_v30 = vld [vmem:[%s4435_s1 + $0x70] sm:$0xff]   ;;  %v3554_v36 = vld [vmem:[%s4435_s1 + $0x78] sm:$0xff]   ;;  %v3556_v46 = vld [vmem:[%s4435_s1 + $0x88] sm:$0xff]  }
   0xa   :  { %v3557_v53 = vld [vmem:[%s4435_s1 + $0x90] sm:$0xff]   ;;  %v3558_v56 = vld [vmem:[%s4435_s1 + $0x98] sm:$0xff]   ;;  %v3559_v7 = vld [vmem:[%s4437_s3 + $0x40] sm:$0xff]  }
   0xb   :  { %3062 = vmatpush3.bf16.msra.mxu0 %v3543_v5  ;;  %3082 = vmatpush3.bf16.msra.mxu1 %v3544_v6  ;;  %v265_v47 = vld [vmem:[#allocation2 + $0x18] sm:$0xff]  ;;  %v268_v55 = vld [vmem:[#allocation2 + $0x30] sm:$0xff]  ;;  %v3560_v8 = vld [vmem:[%s4437_s3] sm:$0xff]  }
   0xc   :  { %3063 = vmatprep.subr.bf16.mxu0 %v3659_v0  ;;  %3083 = vmatprep.subr.bf16.mxu1 %v3659_v0  ;;  %v69_v14 = vld [vmem:[#allocation2 + $0x7] sm:$0xff]  ;;  %v70_v15 = vld [vmem:[#allocation2 + $0xf] sm:$0xff]  ;;  %v71_v22 = vld [vmem:[#allocation2 + $0x17] sm:$0xff] }
   0xd   :  { %v52_v16 = vld [vmem:[#allocation2 + $0x6] sm:$0xff]  ;;  %v75_v17 = vpack.c.bf16 %v70_v15, %v69_v14  ;;  %v53_v18 = vld [vmem:[#allocation2 + $0xe] sm:$0xff]  ;;  %v54_v24 = vld [vmem:[#allocation2 + $0x16] sm:$0xff] }
   0xe   :  { %v58_v19 = vpack.c.bf16 %v53_v18, %v52_v16  ;;  %v72_v23 = vld [vmem:[#allocation2 + $0x1f] sm:$0xff]  ;;  %v263_v39 = vld [vmem:[#allocation2 + $0x8] sm:$0xff]  ;;  %v264_v40 = vld [vmem:[#allocation2 + $0x10] sm:$0xff] }
   0xf   :  { %3064 = vmatpush3.bf16.msra.mxu0 %v3545_v9  ;;  %3084 = vmatpush3.bf16.msra.mxu1 %v3546_v11  ;;  %v55_v25 = vld [vmem:[#allocation2 + $0x1e] sm:$0xff]  ;;  %v76_v27 = vpack.c.bf16 %v72_v23, %v71_v22  ;;  %v73_v31 = vld [vmem:[#allocation2 + $0x27] sm:$0xff]  ;;  %v74_v33 = vld [vmem:[#allocation2 + $0x2f] sm:$0xff]  ;;  %v269_v43 = vpack.c.bf16 %v264_v40, %v263_v39 }
  0x10   :  { %3097 = vmatprep.subr.bf16.mxu0 %v3659_v0  ;;  %3117 = vmatprep.subr.bf16.mxu1 %v3659_v0  ;;  %v59_v28 = vpack.c.bf16 %v55_v25, %v54_v24  ;;  %v56_v34 = vld [vmem:[#allocation2 + $0x26] sm:$0xff]  ;;  %v57_v35 = vld [vmem:[#allocation2 + $0x2e] sm:$0xff]  ;;  %v77_v37 = vpack.c.bf16 %v74_v33, %v73_v31  ;;  %v375_v49 = vld [vmem:[#allocation2 + $0x19] sm:$0xff] }
  0x11   :  { %v60_v38 = vpack.c.bf16 %v57_v35, %v56_v34  ;;  %v373_v41 = vld [vmem:[#allocation2 + $0x9] sm:$0xff]  ;;  %v374_v42 = vld [vmem:[#allocation2 + $0x11] sm:$0xff]  ;;  %v266_v48 = vld [vmem:[#allocation2 + $0x20] sm:$0xff] }
  0x12   :  { %3066 = vmatmul.mubr.msk.bf16.vlgmr.msra.gmra.mrb[0].mxu0 %vm44_vm2, %v75_v17  ;;  %3086 = vmatmul.mubr.msk.bf16.vlgmr.msra.gmra.mrb[0].mxu1 %vm44_vm2, %v58_v19  ;;  %v379_v45 = vpack.c.bf16 %v374_v42, %v373_v41  ;;  %v376_v50 = vld [vmem:[#allocation2 + $0x21] sm:$0xff]  ;;  %v270_v51 = vpack.c.bf16 %v266_v48, %v265_v47  ;;  %v377_v57 = vld [vmem:[#allocation2 + $0x29] sm:$0xff]  ;;  %v378_v58 = vld [vmem:[#allocation2 + $0x31] sm:$0xff] }
  0x13   :  { %3098 = vmatpush3.bf16.msra.mxu0 %v3547_v13  ;;  %3069 = vmatprep.mubr.msk.bf16.mxu0 %vm3660_vm1, %v3659_v0  ;;  %v380_v52 = vpack.c.bf16 %v376_v50, %v375_v49  ;;  %v267_v54 = vld [vmem:[#allocation2 + $0x28] sm:$0xff]  ;;  %v381_v60 = vpack.c.bf16 %v378_v58, %v377_v57  ;;  %v484_v62 = vld [vmem:[#allocation2 + $0x12] sm:$0xff]  ;;  %v485_v1 = vld [vmem:[#allocation2 + $0x1a] sm:$0xff] }
  0x14   :  { %3099 = vmatprep.subr.bf16.mxu0 %v3659_v0  ;;  %3089 = vmatprep.mubr.msk.bf16.mxu1 %vm3660_vm1, %v3659_v0  ;;  %v271_v59 = vpack.c.bf16 %v268_v55, %v267_v54  ;;  %v483_v61 = vld [vmem:[#allocation2 + $0xa] sm:$0xff]  ;;  %v486_v2 = vld [vmem:[#allocation2 + $0x22] sm:$0xff]  ;;  %v488_v5 = vld [vmem:[#allocation2 + $0x32] sm:$0xff] }
  0x15   :  { %3118 = vmatpush3.bf16.msra.mxu1 %v3549_v20  ;;  %v489_v63 = vpack.c.bf16 %v484_v62, %v483_v61  ;;  %v490_v3 = vpack.c.bf16 %v486_v2, %v485_v1  ;;  %v487_v4 = vld [vmem:[#allocation2 + $0x2a] sm:$0xff]  ;;  %v3565_v13 = vld [vmem:[%s4437_s3 + $0x58] sm:$0xff]   ;;  %v3567_v15 = vld [vmem:[%s4437_s3 + $0x60] sm:$0xff]  }
  0x16   :  { %3119 = vmatprep.subr.bf16.mxu1 %v3659_v0  ;;  %v491_v6 = vpack.c.bf16 %v488_v5, %v487_v4  ;;  %v3561_v9 = vld [vmem:[%s4437_s3 + $0x48] sm:$0xff]   ;;  %v3563_v11 = vld [vmem:[%s4437_s3 + $0x50] sm:$0xff]   ;;  %v3566_v14 = vld [vmem:[%s4437_s3 + $0x18] sm:$0xff]  }
  0x17   :  { %3100 = vmatpush3.bf16.msra.mxu0 %v3548_v21  ;;  %v3562_v10 = vld [vmem:[%s4437_s3 + $0x8] sm:$0xff]   ;;  %v3564_v12 = vld [vmem:[%s4437_s3 + $0x10] sm:$0xff]   ;;  %v3568_v16 = vld [vmem:[%s4437_s3 + $0x20] sm:$0xff]  }
  0x18   :  { %3101 = vmatprep.subr.bf16.mxu0 %v3659_v0  ;;  %v3569_v17 = vld [vmem:[%s4437_s3 + $0x68] sm:$0xff]   ;;  %v3571_v19 = vld [vmem:[%s4437_s3 + $0x70] sm:$0xff]   ;;  %v3573_v21 = vld [vmem:[%s4437_s3 + $0x78] sm:$0xff]  }
  0x19   :  { %3120 = vmatpush3.bf16.msra.mxu1 %v3551_v26  ;;  %v3570_v18 = vld [vmem:[%s4437_s3 + $0x28] sm:$0xff]   ;;  %v3572_v20 = vld [vmem:[%s4437_s3 + $0x30] sm:$0xff]   ;;  %v3574_v22 = vld [vmem:[%s4437_s3 + $0x38] sm:$0xff]  }
  0x1a   :  { %3070 = vmatmul.mubr.msk.bf16.gmra.mrb[4].mxu0 %vm44_vm2, %v76_v27  ;;  %3121 = vmatprep.subr.bf16.mxu1 %v3659_v0 }
  0x1b   :  { %3090 = vmatmul.mubr.msk.bf16.gmra.mrb[4].mxu1 %vm44_vm2, %v59_v28  ;;  %3102 = vmatpush3.bf16.msra.mxu0 %v3550_v29 }
  0x1c   :  { %3073 = vmatprep.mubr.msk.bf16.mxu0 %vm3660_vm1, %v3659_v0  ;;  %3093 = vmatprep.mubr.msk.bf16.mxu1 %vm3660_vm1, %v3659_v0 }
  0x1d   :  { %3103 = vmatprep.subr.bf16.mxu0 %v3659_v0  ;;  %3122 = vmatpush3.bf16.msra.mxu1 %v3553_v30 }
  0x1e   :  { %3123 = vmatprep.subr.bf16.mxu1 %v3659_v0 }
  0x1f   :  { %3104 = vmatpush3.bf16.msra.mxu0 %v3552_v32 }
  0x20   :  { %3137 = vmatprep.subr.bf16.mxu0 %v3659_v0 }
  0x21   :  { %3124 = vmatpush3.bf16.msra.mxu1 %v3554_v36 }
  0x22   :  { %3074 = vmatmul.mubr.msk.bf16.gmra.mrb[8].mxu0 %vm44_vm2, %v77_v37  ;;  %3157 = vmatprep.subr.bf16.mxu1 %v3659_v0 }
  0x23   :  { %3094 = vmatmul.mubr.msk.bf16.gmra.mrb[8].mxu1 %vm44_vm2, %v60_v38  ;;  %3105 = vmatprep.mubr.msk.bf16.mxu0 %vm3660_vm1, %v3659_v0 }
  0x24   :  { %3125 = vmatprep.mubr.msk.bf16.mxu1 %vm3660_vm1, %v3659_v0 }
  0x2a   :  { %3106 = vmatmul.mubr.msk.bf16.vlgmr.msra.gmra.mrb[12].mxu0 %vm44_vm2, %v269_v43 }
  0x2b   :  { %3138 = vmatpush3.bf16.msra.mxu0 %v3555_v44  ;;  %3126 = vmatmul.mubr.msk.bf16.vlgmr.msra.gmra.mrb[12].mxu1 %vm44_vm2, %v379_v45 }
  0x2c   :  { %3139 = vmatprep.subr.bf16.mxu0 %v3659_v0  ;;  %3109 = vmatprep.mubr.msk.bf16.mxu0 %vm3660_vm1, %v3659_v0 }
  0x2d   :  { %3129 = vmatprep.mubr.msk.bf16.mxu1 %vm3660_vm1, %v3659_v0  ;;  %3158 = vmatpush3.bf16.msra.mxu1 %v3559_v7 }
  0x2e   :  { %3159 = vmatprep.subr.bf16.mxu1 %v3659_v0 }
  0x2f   :  { %3140 = vmatpush3.bf16.msra.mxu0 %v3556_v46 }
  0x30   :  { %3141 = vmatprep.subr.bf16.mxu0 %v3659_v0 }
  0x31   :  { %3160 = vmatpush3.bf16.msra.mxu1 %v3561_v9 }
  0x32   :  { %3110 = vmatmul.mubr.msk.bf16.gmra.mrb[16].mxu0 %vm44_vm2, %v270_v51  ;;  %3161 = vmatprep.subr.bf16.mxu1 %v3659_v0 }
  0x33   :  { %3130 = vmatmul.mubr.msk.bf16.gmra.mrb[16].mxu1 %vm44_vm2, %v380_v52  ;;  %3142 = vmatpush3.bf16.msra.mxu0 %v3557_v53 }
  0x34   :  { %3113 = vmatprep.mubr.msk.bf16.mxu0 %vm3660_vm1, %v3659_v0  ;;  %3133 = vmatprep.mubr.msk.bf16.mxu1 %vm3660_vm1, %v3659_v0 }
  0x35   :  { %3143 = vmatprep.subr.bf16.mxu0 %v3659_v0  ;;  %3162 = vmatpush3.bf16.msra.mxu1 %v3563_v11 }
  0x36   :  { %3163 = vmatprep.subr.bf16.mxu1 %v3659_v0 }
  0x37   :  { %3144 = vmatpush3.bf16.msra.mxu0 %v3558_v56 }
  0x38   :  { %3185 = vmatprep.subr.bf16.mxu0 %v3659_v0 }
  0x39   :  { %3164 = vmatpush3.bf16.msra.mxu1 %v3565_v13 }
  0x3a   :  { %3114 = vmatmul.mubr.msk.bf16.gmra.mrb[20].mxu0 %vm44_vm2, %v271_v59  ;;  %3165 = vmatprep.subr.bf16.mxu1 %v3659_v0 }
  0x3b   :  { %3134 = vmatmul.mubr.msk.bf16.gmra.mrb[20].mxu1 %vm44_vm2, %v381_v60  ;;  %3145 = vmatprep.mubr.msk.bf16.mxu0 %vm3660_vm1, %v3659_v0 }
  0x3c   :  { %3173 = vmatprep.mubr.msk.bf16.mxu1 %vm3660_vm1, %v3659_v0 }
  0x3d   :  { %3166 = vmatpush3.bf16.msra.mxu1 %v3567_v15 }
  0x3e   :  { %3167 = vmatprep.subr.bf16.mxu1 %v3659_v0 }
  0x41   :  { %3168 = vmatpush3.bf16.msra.mxu1 %v3569_v17 }
  0x42   :  { %3146 = vmatmul.mubr.msk.bf16.vlgmr.msra.gmra.mrb[24].mxu0 %vm44_vm2, %v489_v63  ;;  %3169 = vmatprep.subr.bf16.mxu1 %v3659_v0 }
  0x43   :  { %3149 = vmatprep.mubr.msk.bf16.mxu0 %vm3660_vm1, %v3659_v0  ;;  %3186 = vmatpush3.bf16.msra.mxu0 %v3560_v8 }
  0x44   :  { %3187 = vmatprep.subr.bf16.mxu0 %v3659_v0 }
  0x45   :  { %3170 = vmatpush3.bf16.msra.mxu1 %v3571_v19 }
  0x46   :  { %3171 = vmatprep.subr.bf16.mxu1 %v3659_v0 }
  0x47   :  { %3188 = vmatpush3.bf16.msra.mxu0 %v3562_v10 }
  0x48   :  { %3189 = vmatprep.subr.bf16.mxu0 %v3659_v0 }
  0x49   :  { %3172 = vmatpush3.bf16.msra.mxu1 %v3573_v21  ;;  %v2596_v21 = vld [vmem:[%s4438_s2] ss:$0 sm:$0xff] }
  0x4a   :  { %3150 = vmatmul.mubr.msk.bf16.gmra.mrb[28].mxu0 %vm44_vm2, %v490_v3  ;;  %3213 = vmatprep.subr.bf16.mxu1 %v3659_v0 }
  0x4b   :  { %3153 = vmatprep.mubr.msk.bf16.mxu0 %vm3660_vm1, %v3659_v0  ;;  %3190 = vmatpush3.bf16.msra.mxu0 %v3564_v12 }
  0x4c   :  { %3191 = vmatprep.subr.bf16.mxu0 %v3659_v0 }
  0x4f   :  { %3192 = vmatpush3.bf16.msra.mxu0 %v3566_v14 }
  0x50   :  { %3193 = vmatprep.subr.bf16.mxu0 %v3659_v0 }
  0x52   :  { %3154 = vmatmul.mubr.msk.bf16.gmra.mrb[32].mxu0 %vm44_vm2, %v491_v6 }
  0x53   :  { %3201 = vmatprep.mubr.msk.bf16.mxu0 %vm3660_vm1, %v3659_v0  ;;  %3194 = vmatpush3.bf16.msra.mxu0 %v3568_v16 }
  0x54   :  { %3195 = vmatprep.subr.bf16.mxu0 %v3659_v0 }
  0x57   :  { %3196 = vmatpush3.bf16.msra.mxu0 %v3570_v18 }
  0x58   :  { %3197 = vmatprep.subr.bf16.mxu0 %v3659_v0 }
  0x5b   :  { %3198 = vmatpush3.bf16.msra.mxu0 %v3572_v20 }
  0x5c   :  { %3199 = vmatprep.subr.bf16.mxu0 %v3659_v0 }
  0x5f   :  { %3200 = vmatpush3.bf16.msra.mxu0 %v3574_v22 }
  0x60   :  { %3241 = vmatprep.subr.bf16.mxu0 %v3659_v0 }
  0xe5   :  { %v154_v23 = vpop.f32.mrb[0].mxu0  ;;  %v242_v24 = vpop.f32.mrb[0].mxu1 }
  0xe6   :  { %v3067_v25 = vpop.f32.mrb[1].mxu0  ;;  %v243_v26 = vadd.f32 %v242_v24, %v154_v23  ;;  %v3087_v27 = vpop.f32.mrb[1].mxu1 }
  0xe7   :  { %v157_v28 = vpop.f32.mrb[2].mxu0  ;;  %v245_v29 = vpop.f32.mrb[2].mxu1 }
  0xe8   :  { %v3068_v30 = vpop.f32.mrb[3].mxu0  ;;  %v246_v31 = vadd.f32 %v245_v29, %v157_v28  ;;  %v3088_v32 = vpop.f32.mrb[3].mxu1 }
  0xed   :  { %v162_v33 = vpop.f32.mrb[4].mxu0 }
  0xee   :  { %v250_v34 = vpop.f32.mrb[4].mxu1  ;;  %v3071_v35 = vpop.f32.mrb[5].mxu0 }
  0xef   :  { %v3091_v36 = vpop.f32.mrb[5].mxu1  ;;  %v164_v37 = vpop.f32.mrb[6].mxu0 }
  0xf0   :  { %v252_v38 = vpop.f32.mrb[6].mxu1  ;;  %v3072_v39 = vpop.f32.mrb[7].mxu0 }
  0xf1   :  { %v253_v40 = vadd.f32 %v252_v38, %v164_v37  ;;  %v3092_v41 = vpop.f32.mrb[7].mxu1  ;;  %v3575_v37 = vld [vmem:[%s4437_s3 + $0x80] sm:$0xff]  }
  0xf2   :  { %v3576_v38 = vld [vmem:[%s4437_s3 + $0xc0] sm:$0xff]  }
  0xf5   :  { %v169_v42 = vpop.f32.mrb[8].mxu0 }
  0xf6   :  { %v3075_v43 = vpop.f32.mrb[9].mxu0  ;;  %v257_v44 = vpop.f32.mrb[8].mxu1 }
  0xf7   :  { %v258_v45 = vadd.f32 %v257_v44, %v169_v42  ;;  %v172_v46 = vpop.f32.mrb[10].mxu0  ;;  %v3095_v47 = vpop.f32.mrb[9].mxu1 }
  0xf8   :  { %v3076_v48 = vpop.f32.mrb[11].mxu0  ;;  %v260_v49 = vpop.f32.mrb[10].mxu1  ;;  %v3577_v47 = vld [vmem:[%s4437_s3 + $0x88] sm:$0xff]  }
  0xf9   :  { %v3096_v50 = vpop.f32.mrb[11].mxu1  ;;  %v3578_v48 = vld [vmem:[%s4437_s3 + $0xc8] sm:$0xff]  }
  0xfd   :  { %v348_v51 = vpop.f32.mrb[12].mxu0 }
  0xfe   :  { %v369_v52 = vadd.f32 %v348_v51, %v243_v26  ;;  %v3107_v53 = vpop.f32.mrb[13].mxu0  ;;  %v458_v54 = vpop.f32.mrb[12].mxu1 }
  0xff   :  { %v351_v55 = vpop.f32.mrb[14].mxu0  ;;  %v3127_v56 = vpop.f32.mrb[13].mxu1  ;;  %v3579_v53 = vld [vmem:[%s4437_s3 + $0x90] sm:$0xff]  }
 0x100   :  { %v370_v57 = vadd.f32 %v351_v55, %v246_v31  ;;  %v479_v58 = vadd.f32 %v458_v54, %v369_v52  ;;  %v3108_v59 = vpop.f32.mrb[15].mxu0  ;;  %v461_v60 = vpop.f32.mrb[14].mxu1  ;;  %v3580_v54 = vld [vmem:[%s4437_s3 + $0xd0] sm:$0xff]  }
 0x101   :  { %v3128_v61 = vpop.f32.mrb[15].mxu1 }
 0x102   :  { %v480_v62 = vadd.f32 %v461_v60, %v370_v57  ;;  %v3581_v60 = vld [vmem:[%s4437_s3 + $0x98] sm:$0xff]  }
 0x103   :  { %v3582_v61 = vld [vmem:[%s4437_s3 + $0xd8] sm:$0xff]  }
 0x105   :  { %v356_v63 = vpop.f32.mrb[16].mxu0 }
 0x106   :  { %v3111_v1 = vpop.f32.mrb[17].mxu0  ;;  %v466_v2 = vpop.f32.mrb[16].mxu1 }
 0x107   :  { %v358_v3 = vpop.f32.mrb[18].mxu0  ;;  %v3131_v4 = vpop.f32.mrb[17].mxu1 }
 0x108   :  { %v371_v5 = vadd.f32 %v358_v3, %v253_v40  ;;  %v3112_v6 = vpop.f32.mrb[19].mxu0  ;;  %v468_v7 = vpop.f32.mrb[18].mxu1  ;;  %v3583_v3 = vld [vmem:[%s4437_s3 + $0xa0] sm:$0xff]  }
 0x109   :  { %v3132_v8 = vpop.f32.mrb[19].mxu1  ;;  %v3584_v4 = vld [vmem:[%s4437_s3 + $0xe0] sm:$0xff]  }
 0x10a   :  { %v481_v9 = vadd.f32 %v468_v7, %v371_v5  ;;  %v3585_v7 = vld [vmem:[%s4437_s3 + $0xa8] sm:$0xff]  }
 0x10b   :  { %v3586_v8 = vld [vmem:[%s4437_s3 + $0xe8] sm:$0xff]  }
 0x10d   :  { %v363_v10 = vpop.f32.mrb[20].mxu0 }
 0x10e   :  { %v372_v11 = vadd.f32 %v363_v10, %v258_v45  ;;  %v3115_v12 = vpop.f32.mrb[21].mxu0  ;;  %v473_v13 = vpop.f32.mrb[20].mxu1  ;;  %v3588_v10 = vld [vmem:[%s4437_s3 + $0xf0] sm:$0xff]  }
 0x10f   :  { %v366_v14 = vpop.f32.mrb[22].mxu0  ;;  %v3135_v15 = vpop.f32.mrb[21].mxu1  ;;  %v3590_v12 = vld [vmem:[%s4437_s3 + $0xf8] sm:$0xff]  }
 0x110   :  { %v482_v16 = vadd.f32 %v473_v13, %v372_v11  ;;  %v3116_v17 = vpop.f32.mrb[23].mxu0  ;;  %v476_v18 = vpop.f32.mrb[22].mxu1  ;;  %v3589_v11 = vld [vmem:[%s4437_s3 + $0xb8] sm:$0xff]   ;;  %v3591_v15 = vld [vmem:[%s4437_s3 + $0x100] sm:$0xff]  }
 0x111   :  { %v3136_v19 = vpop.f32.mrb[23].mxu1  ;;  %v3592_v17 = vld [vmem:[%s4437_s3 + $0x108] sm:$0xff]   ;;  %v867_v18 = vld [vmem:[#allocation3 + $0x18] sm:$0xff] }
 0x115   :  { %v568_v20 = vpop.f32.mrb[24].mxu0 }
 0x116   :  { %v589_v22 = vadd.f32 %v568_v20, %v479_v58  ;;  %v3147_v23 = vpop.f32.mrb[25].mxu0 }
 0x117   :  { %v571_v24 = vpop.f32.mrb[26].mxu0 }
 0x118   :  { %v3933_v25 = vadd.f32 %v2596_v21, %v589_v22  ;;  %v590_v26 = vadd.f32 %v571_v24, %v480_v62  ;;  %v3148_v27 = vpop.f32.mrb[27].mxu0  ;;  %v3594_v24 = vld [vmem:[%s4437_s3 + $0x118] sm:$0xff]  }
 0x119   :  { %v1003_v27 = vld [vmem:[#allocation3 + $0x31] sm:$0xff] }
 0x11a   :  { %604 = vst [vmem:[#allocation3 + $0x8] sm:$0xff] %v3933_v25  ;;  %v3936_v28 = vadd.f32 %v2596_v21, %v590_v26 }
 0x11c   :  { %605 = vst [vmem:[#allocation3 + $0x10] sm:$0xff] %v3936_v28  ;;  %v871_v29 = vpack.c.bf16 %v3936_v28, %v3933_v25  ;;  %v870_v25 = vld [vmem:[#allocation3 + $0x30] sm:$0xff]  ;;  %v3595_v28 = vld [vmem:[%s4437_s3 + $0x120] sm:$0xff]  }
 0x11d   :  { %v576_v30 = vpop.f32.mrb[28].mxu0 }
 0x11e   :  { %v3151_v31 = vpop.f32.mrb[29].mxu0 }
 0x11f   :  { %v578_v32 = vpop.f32.mrb[30].mxu0  ;;  %v3596_v31 = vld [vmem:[%s4437_s3 + $0x128] sm:$0xff]  }
 0x120   :  { %v591_v33 = vadd.f32 %v578_v32, %v481_v9  ;;  %v3152_v34 = vpop.f32.mrb[31].mxu0  ;;  %v3587_v9 = vld [vmem:[%s4437_s3 + $0xb0] sm:$0xff]  }
 0x121   :  { %v633_v36 = vld [vmem:[#allocation3 + $0x7] sm:$0xff]  ;;  %v3597_v32 = vld [vmem:[%s4437_s3 + $0x130] sm:$0xff]  }
 0x122   :  { %v3941_v35 = vadd.f32 %v2596_v21, %v591_v33  ;;  %v608_v40 = vld [vmem:[#allocation3 + $0x6] sm:$0xff]  ;;  %v3598_v33 = vld [vmem:[%s4437_s3 + $0x138] sm:$0xff]  }
 0x123   :  { %v634_v39 = vld [vmem:[#allocation3 + $0xf] sm:$0xff]  ;;  %v635_v52 = vld [vmem:[#allocation3 + $0x17] sm:$0xff] }
 0x124   :  { %v609_v41 = vld [vmem:[#allocation3 + $0xe] sm:$0xff]  ;;  %606 = vst [vmem:[#allocation3 + $0x20] sm:$0xff] %v3941_v35  ;;  %v639_v42 = vpack.c.bf16 %v634_v39, %v633_v36  ;;  %v610_v56 = vld [vmem:[#allocation3 + $0x16] sm:$0xff]  ;;  %v872_v22 = vpack.c.bf16 %v3941_v35, %v867_v18 }
 0x125   :  { %v614_v43 = vpack.c.bf16 %v609_v41, %v608_v40  ;;  %v583_v44 = vpop.f32.mrb[32].mxu0  ;;  %v998_v13 = vld [vmem:[#allocation3 + $0x9] sm:$0xff]  ;;  %v999_v14 = vld [vmem:[#allocation3 + $0x11] sm:$0xff] }
 0x126   :  { %v592_v45 = vadd.f32 %v583_v44, %v482_v16  ;;  %3174 = vmatmul.mubr.bf16.vlgmr.msra.gmra.mrb[24].mxu1 %v639_v42  ;;  %v3155_v46 = vpop.f32.mrb[33].mxu0  ;;  %v1004_v16 = vpack.c.bf16 %v999_v14, %v998_v13  ;;  %v1131_v34 = vld [vmem:[#allocation3 + $0xa] sm:$0xff]  ;;  %v1132_v35 = vld [vmem:[#allocation3 + $0x12] sm:$0xff]  ;;  %v3601_v44 = vld [vmem:[%s4439_s5] sm:$0xff]  }
 0x127   :  { %3202 = vmatmul.mubr.bf16.vlgmr.msra.gmra.mrb[36].mxu0 %v614_v43  ;;  %3214 = vmatpush3.bf16.msra.mxu1 %v3575_v37  ;;  %v586_v49 = vpop.f32.mrb[34].mxu0  ;;  %v1137_v36 = vpack.c.bf16 %v1132_v35, %v1131_v34  ;;  %v1136_v41 = vld [vmem:[#allocation3 + $0x32] sm:$0xff]  ;;  %v3599_v43 = vld [vmem:[%s4439_s5 + $0x20] sm:$0xff]   ;;  %v3603_v46 = vld [vmem:[%s4439_s5 + $0x8] sm:$0xff]  }
 0x128   :  { %3242 = vmatpush3.bf16.msra.mxu0 %v3576_v38  ;;  %v3956_v50 = vadd.f32 %v2596_v21, %v592_v45  ;;  %3215 = vmatprep.subr.bf16.mxu1 %v3659_v0  ;;  %v3156_v51 = vpop.f32.mrb[35].mxu0  ;;  %v3593_v21 = vld [vmem:[%s4437_s3 + $0x110] sm:$0xff]   ;;  %v3600_v45 = vld [vmem:[%s4439_s5 + $0x28] sm:$0xff]   ;;  %v3605_v49 = vld [vmem:[%s4439_s5 + $0x38] sm:$0xff]  }
 0x129   :  { %3243 = vmatprep.subr.bf16.mxu0 %v3659_v0  ;;  %3177 = vmatprep.mubr.msk.bf16.mxu1 %vm3660_vm1, %v3659_v0 }
 0x12a   :  { %3205 = vmatprep.mubr.msk.bf16.mxu0 %vm3660_vm1, %v3659_v0  ;;  %607 = vst [vmem:[#allocation3 + $0x28] sm:$0xff] %v3956_v50 }
 0x12b   :  { %3216 = vmatpush3.bf16.msra.mxu1 %v3577_v47  ;;  %v636_v55 = vld [vmem:[#allocation3 + $0x1f] sm:$0xff]  ;;  %v3602_v47 = vld [vmem:[%s4439_s5 + $0x30] sm:$0xff]  }
 0x12c   :  { %3244 = vmatpush3.bf16.msra.mxu0 %v3578_v48  ;;  %v611_v57 = vld [vmem:[#allocation3 + $0x1e] sm:$0xff]  ;;  %3217 = vmatprep.subr.bf16.mxu1 %v3659_v0  ;;  %v640_v58 = vpack.c.bf16 %v636_v55, %v635_v52  ;;  %v3604_v48 = vld [vmem:[%s4439_s5 + $0x10] sm:$0xff]  }
 0x12d   :  { %3245 = vmatprep.subr.bf16.mxu0 %v3659_v0  ;;  %v615_v59 = vpack.c.bf16 %v611_v57, %v610_v56  ;;  %v1000_v20 = vld [vmem:[#allocation3 + $0x19] sm:$0xff] }
 0x12e   :  { %3178 = vmatmul.mubr.bf16.gmra.mrb[28].mxu1 %v640_v58  ;;  %v1133_v38 = vld [vmem:[#allocation3 + $0x1a] sm:$0xff] }
 0x12f   :  { %3206 = vmatmul.mubr.bf16.gmra.mrb[40].mxu0 %v615_v59  ;;  %3218 = vmatpush3.bf16.msra.mxu1 %v3579_v53 }
 0x130   :  { %3246 = vmatpush3.bf16.msra.mxu0 %v3580_v54  ;;  %3219 = vmatprep.subr.bf16.mxu1 %v3659_v0 }
 0x131   :  { %3247 = vmatprep.subr.bf16.mxu0 %v3659_v0  ;;  %3181 = vmatprep.mubr.msk.bf16.mxu1 %vm3660_vm1, %v3659_v0  ;;  %v637_v62 = vld [vmem:[#allocation3 + $0x27] sm:$0xff]  ;;  %v638_v63 = vld [vmem:[#allocation3 + $0x2f] sm:$0xff] }
 0x132   :  { %3209 = vmatprep.mubr.msk.bf16.mxu0 %vm3660_vm1, %v3659_v0  ;;  %v612_v1 = vld [vmem:[#allocation3 + $0x26] sm:$0xff]  ;;  %v613_v2 = vld [vmem:[#allocation3 + $0x2e] sm:$0xff]  ;;  %v641_v5 = vpack.c.bf16 %v638_v63, %v637_v62 }
 0x133   :  { %3220 = vmatpush3.bf16.msra.mxu1 %v3581_v60  ;;  %v616_v6 = vpack.c.bf16 %v613_v2, %v612_v1  ;;  %v1001_v19 = vld [vmem:[#allocation3 + $0x21] sm:$0xff]  ;;  %v1002_v26 = vld [vmem:[#allocation3 + $0x29] sm:$0xff] }
 0x134   :  { %3248 = vmatpush3.bf16.msra.mxu0 %v3582_v61  ;;  %3221 = vmatprep.subr.bf16.mxu1 %v3659_v0  ;;  %v1005_v23 = vpack.c.bf16 %v1001_v19, %v1000_v20  ;;  %v1006_v30 = vpack.c.bf16 %v1003_v27, %v1002_v26  ;;  %v1134_v37 = vld [vmem:[#allocation3 + $0x22] sm:$0xff]  ;;  %v1135_v40 = vld [vmem:[#allocation3 + $0x2a] sm:$0xff] }
 0x135   :  { %3249 = vmatprep.subr.bf16.mxu0 %v3659_v0  ;;  %v1138_v39 = vpack.c.bf16 %v1134_v37, %v1133_v38  ;;  %v1139_v42 = vpack.c.bf16 %v1136_v41, %v1135_v40 }
 0x136   :  { %3182 = vmatmul.mubr.bf16.gmra.mrb[32].mxu1 %v641_v5 }
 0x137   :  { %3210 = vmatmul.mubr.bf16.gmra.mrb[44].mxu0 %v616_v6  ;;  %3222 = vmatpush3.bf16.msra.mxu1 %v3583_v3 }
 0x138   :  { %3250 = vmatpush3.bf16.msra.mxu0 %v3584_v4  ;;  %3223 = vmatprep.subr.bf16.mxu1 %v3659_v0 }
 0x139   :  { %3251 = vmatprep.subr.bf16.mxu0 %v3659_v0  ;;  %3229 = vmatprep.mubr.msk.bf16.mxu1 %vm3660_vm1, %v3659_v0 }
 0x13a   :  { %3257 = vmatprep.mubr.msk.bf16.mxu0 %vm3660_vm1, %v3659_v0 }
 0x13b   :  { %3224 = vmatpush3.bf16.msra.mxu1 %v3585_v7 }
 0x13c   :  { %3252 = vmatpush3.bf16.msra.mxu0 %v3586_v8  ;;  %3225 = vmatprep.subr.bf16.mxu1 %v3659_v0 }
 0x13d   :  { %3253 = vmatprep.subr.bf16.mxu0 %v3659_v0 }
 0x13f   :  { %3226 = vmatpush3.bf16.msra.mxu1 %v3587_v9 }
 0x140   :  { %3254 = vmatpush3.bf16.msra.mxu0 %v3588_v10  ;;  %3227 = vmatprep.subr.bf16.mxu1 %v3659_v0 }
 0x141   :  { %3255 = vmatprep.subr.bf16.mxu0 %v3659_v0 }
 0x143   :  { %3228 = vmatpush3.bf16.msra.mxu1 %v3589_v11 }
 0x144   :  { %3256 = vmatpush3.bf16.msra.mxu0 %v3590_v12  ;;  %3269 = vmatprep.subr.bf16.mxu1 %v3659_v0 }
 0x145   :  { %3297 = vmatprep.subr.bf16.mxu0 %v3659_v0 }
 0x146   :  { %3230 = vmatmul.mubr.bf16.vlgmr.msra.gmra.mrb[36].mxu1 %v871_v29  ;;  %v873_v29 = vpack.c.bf16 %v870_v25, %v3956_v50  ;;  %v3606_v50 = vld [vmem:[%s4439_s5 + $0x18] sm:$0xff]  }
 0x147   :  { %3258 = vmatmul.mubr.bf16.vlgmr.msra.gmra.mrb[48].mxu0 %v1004_v16  ;;  %3270 = vmatpush3.bf16.msra.mxu1 %v3591_v15 }
 0x148   :  { %3233 = vmatprep.mubr.msk.bf16.mxu1 %vm3660_vm1, %v3659_v0  ;;  %3271 = vmatprep.subr.bf16.mxu1 %v3659_v0 }
 0x149   :  { %3261 = vmatprep.mubr.msk.bf16.mxu0 %vm3660_vm1, %v3659_v0  ;;  %3298 = vmatpush3.bf16.msra.mxu0 %v3599_v43 }
 0x14a   :  { %3299 = vmatprep.subr.bf16.mxu0 %v3659_v0 }
 0x14b   :  { %3272 = vmatpush3.bf16.msra.mxu1 %v3592_v17 }
 0x14c   :  { %3273 = vmatprep.subr.bf16.mxu1 %v3659_v0 }
 0x14d   :  { %3300 = vmatpush3.bf16.msra.mxu0 %v3600_v45 }
 0x14e   :  { %3234 = vmatmul.mubr.bf16.gmra.mrb[40].mxu1 %v872_v22  ;;  %3301 = vmatprep.subr.bf16.mxu0 %v3659_v0 }
 0x14f   :  { %3262 = vmatmul.mubr.bf16.gmra.mrb[52].mxu0 %v1005_v23  ;;  %3274 = vmatpush3.bf16.msra.mxu1 %v3593_v21 }
 0x150   :  { %3237 = vmatprep.mubr.msk.bf16.mxu1 %vm3660_vm1, %v3659_v0  ;;  %3275 = vmatprep.subr.bf16.mxu1 %v3659_v0 }
 0x151   :  { %3265 = vmatprep.mubr.msk.bf16.mxu0 %vm3660_vm1, %v3659_v0  ;;  %3302 = vmatpush3.bf16.msra.mxu0 %v3602_v47 }
 0x152   :  { %3303 = vmatprep.subr.bf16.mxu0 %v3659_v0 }
 0x153   :  { %3276 = vmatpush3.bf16.msra.mxu1 %v3594_v24 }
 0x154   :  { %3277 = vmatprep.subr.bf16.mxu1 %v3659_v0 }
 0x155   :  { %3304 = vmatpush3.bf16.msra.mxu0 %v3605_v49  ;;  %v2701_v49 = vld [vmem:[%s4440_s4] ss:$0 sm:$0xff] }
 0x156   :  { %3238 = vmatmul.mubr.bf16.gmra.mrb[44].mxu1 %v873_v29  ;;  %3337 = vmatprep.subr.bf16.mxu0 %v3659_v0 }
 0x157   :  { %3266 = vmatmul.mubr.bf16.gmra.mrb[56].mxu0 %v1006_v30  ;;  %3278 = vmatpush3.bf16.msra.mxu1 %v3595_v28 }
 0x158   :  { %3285 = vmatprep.mubr.msk.bf16.mxu1 %vm3660_vm1, %v3659_v0  ;;  %3279 = vmatprep.subr.bf16.mxu1 %v3659_v0 }
 0x159   :  { %3305 = vmatprep.mubr.msk.bf16.mxu0 %vm3660_vm1, %v3659_v0 }
 0x15b   :  { %3280 = vmatpush3.bf16.msra.mxu1 %v3596_v31 }
 0x15c   :  { %3281 = vmatprep.subr.bf16.mxu1 %v3659_v0 }
 0x15f   :  { %3282 = vmatpush3.bf16.msra.mxu1 %v3597_v32 }
 0x160   :  { %3283 = vmatprep.subr.bf16.mxu1 %v3659_v0 }
 0x163   :  { %3284 = vmatpush3.bf16.msra.mxu1 %v3598_v33 }
 0x164   :  { %3317 = vmatprep.subr.bf16.mxu1 %v3659_v0 }
 0x166   :  { %3286 = vmatmul.mubr.bf16.vlgmr.msra.gmra.mrb[48].mxu1 %v1137_v36 }
 0x167   :  { %3289 = vmatprep.mubr.msk.bf16.mxu1 %vm3660_vm1, %v3659_v0  ;;  %3318 = vmatpush3.bf16.msra.mxu1 %v3601_v44 }
 0x168   :  { %3319 = vmatprep.subr.bf16.mxu1 %v3659_v0 }
 0x16b   :  { %3320 = vmatpush3.bf16.msra.mxu1 %v3603_v46 }
 0x16c   :  { %3321 = vmatprep.subr.bf16.mxu1 %v3659_v0 }
 0x16e   :  { %3290 = vmatmul.mubr.bf16.gmra.mrb[52].mxu1 %v1138_v39 }
 0x16f   :  { %3293 = vmatprep.mubr.msk.bf16.mxu1 %vm3660_vm1, %v3659_v0  ;;  %3322 = vmatpush3.bf16.msra.mxu1 %v3604_v48 }
 0x170   :  { %3323 = vmatprep.subr.bf16.mxu1 %v3659_v0 }
 0x173   :  { %3324 = vmatpush3.bf16.msra.mxu1 %v3606_v50 }
 0x174   :  { %3357 = vmatprep.subr.bf16.mxu1 %v3659_v0 }
 0x176   :  { %3294 = vmatmul.mubr.bf16.gmra.mrb[56].mxu1 %v1139_v42 }
 0x177   :  { %3325 = vmatprep.mubr.msk.bf16.mxu1 %vm3660_vm1, %v3659_v0 }
 0x1f9   :  { %v741_v51 = vpop.f32.mrb[24].mxu1 }
 0x1fa   :  { %v844_v52 = vpop.f32.mrb[36].mxu0  ;;  %v3175_v54 = vpop.f32.mrb[25].mxu1 }
 0x1fb   :  { %v845_v53 = vadd.f32 %v844_v52, %v741_v51  ;;  %v3203_v55 = vpop.f32.mrb[37].mxu0  ;;  %v744_v56 = vpop.f32.mrb[26].mxu1 }
 0x1fc   :  { %v847_v57 = vpop.f32.mrb[38].mxu0  ;;  %v3176_v59 = vpop.f32.mrb[27].mxu1 }
 0x1fd   :  { %v848_v58 = vadd.f32 %v847_v57, %v744_v56  ;;  %v3204_v60 = vpop.f32.mrb[39].mxu0 }
 0x201   :  { %v749_v61 = vpop.f32.mrb[28].mxu1 }
 0x202   :  { %v852_v62 = vpop.f32.mrb[40].mxu0  ;;  %v3179_v63 = vpop.f32.mrb[29].mxu1 }
 0x203   :  { %v3207_v1 = vpop.f32.mrb[41].mxu0  ;;  %v751_v2 = vpop.f32.mrb[30].mxu1 }
 0x204   :  { %v854_v3 = vpop.f32.mrb[42].mxu0  ;;  %v3180_v5 = vpop.f32.mrb[31].mxu1 }
 0x205   :  { %v855_v4 = vadd.f32 %v854_v3, %v751_v2  ;;  %v3208_v6 = vpop.f32.mrb[43].mxu0 }
 0x209   :  { %v756_v7 = vpop.f32.mrb[32].mxu1 }
 0x20a   :  { %v859_v8 = vpop.f32.mrb[44].mxu0  ;;  %v3183_v10 = vpop.f32.mrb[33].mxu1 }
 0x20b   :  { %v860_v9 = vadd.f32 %v859_v8, %v756_v7  ;;  %v3211_v11 = vpop.f32.mrb[45].mxu0  ;;  %v759_v12 = vpop.f32.mrb[34].mxu1  ;;  %v3607_v10 = vld [vmem:[%s4439_s5 + $0x40] sm:$0xff]  }
 0x20c   :  { %v862_v13 = vpop.f32.mrb[46].mxu0  ;;  %v3184_v14 = vpop.f32.mrb[35].mxu1 }
 0x20d   :  { %v3212_v15 = vpop.f32.mrb[47].mxu0 }
 0x219   :  { %v973_v16 = vpop.f32.mrb[36].mxu1 }
 0x21a   :  { %v1106_v17 = vpop.f32.mrb[48].mxu0  ;;  %v994_v18 = vadd.f32 %v973_v16, %v845_v53  ;;  %v3231_v19 = vpop.f32.mrb[37].mxu1 }
 0x21b   :  { %v3259_v20 = vpop.f32.mrb[49].mxu0  ;;  %v976_v21 = vpop.f32.mrb[38].mxu1  ;;  %v3609_v19 = vld [vmem:[%s4439_s5 + $0x60] sm:$0xff]  }
 0x21c   :  { %v1109_v22 = vpop.f32.mrb[50].mxu0  ;;  %v1127_v23 = vadd.f32 %v1106_v17, %v994_v18  ;;  %v995_v24 = vadd.f32 %v976_v21, %v848_v58  ;;  %v3232_v25 = vpop.f32.mrb[39].mxu1  ;;  %v3608_v21 = vld [vmem:[%s4439_s5 + $0x48] sm:$0xff]  }
 0x21d   :  { %v3260_v26 = vpop.f32.mrb[51].mxu0  ;;  %v3610_v25 = vld [vmem:[%s4439_s5 + $0x50] sm:$0xff]  }
 0x21e   :  { %v1128_v27 = vadd.f32 %v1109_v22, %v995_v24 }
 0x221   :  { %v981_v28 = vpop.f32.mrb[40].mxu1 }
 0x222   :  { %v1114_v29 = vpop.f32.mrb[52].mxu0  ;;  %v3235_v30 = vpop.f32.mrb[41].mxu1 }
 0x223   :  { %v3263_v31 = vpop.f32.mrb[53].mxu0  ;;  %v983_v32 = vpop.f32.mrb[42].mxu1 }
 0x224   :  { %v1116_v33 = vpop.f32.mrb[54].mxu0  ;;  %v996_v34 = vadd.f32 %v983_v32, %v855_v4  ;;  %v3236_v35 = vpop.f32.mrb[43].mxu1  ;;  %v3612_v31 = vld [vmem:[%s4439_s5 + $0x70] sm:$0xff]   ;;  %v3613_v32 = vld [vmem:[%s4439_s5 + $0x58] sm:$0xff]  }
 0x225   :  { %v3264_v36 = vpop.f32.mrb[55].mxu0 }
 0x226   :  { %v1129_v37 = vadd.f32 %v1116_v33, %v996_v34  ;;  %v3614_v33 = vld [vmem:[%s4439_s5 + $0x78] sm:$0xff]  }
 0x229   :  { %v988_v38 = vpop.f32.mrb[44].mxu1 }
 0x22a   :  { %v1121_v39 = vpop.f32.mrb[56].mxu0  ;;  %v997_v40 = vadd.f32 %v988_v38, %v860_v9  ;;  %v3239_v41 = vpop.f32.mrb[45].mxu1 }
 0x22b   :  { %v3267_v42 = vpop.f32.mrb[57].mxu0  ;;  %v991_v43 = vpop.f32.mrb[46].mxu1 }
 0x22c   :  { %v1124_v44 = vpop.f32.mrb[58].mxu0  ;;  %v1130_v45 = vadd.f32 %v1121_v39, %v997_v40  ;;  %v3240_v46 = vpop.f32.mrb[47].mxu1 }
 0x22d   :  { %v3268_v47 = vpop.f32.mrb[59].mxu0  ;;  %v3615_v44 = vld [vmem:[%s4439_s5 + $0x80] sm:$0xff]  }
 0x22e   :  { %v3616_v47 = vld [vmem:[%s4439_s5 + $0x88] sm:$0xff]  }
 0x239   :  { %v1239_v48 = vpop.f32.mrb[48].mxu1 }
 0x23a   :  { %v1260_v50 = vadd.f32 %v1239_v48, %v1127_v23  ;;  %v3287_v51 = vpop.f32.mrb[49].mxu1  ;;  %v3611_v23 = vld [vmem:[%s4439_s5 + $0x68] sm:$0xff]   ;;  %v1500_v48 = vld [vmem:[#allocation2 + $0x18] sm:$0xff] }
 0x23b   :  { %v1242_v52 = vpop.f32.mrb[50].mxu1 }
 0x23c   :  { %v1271_v53 = vadd.f32 %v2701_v49, %v1260_v50  ;;  %v1261_v54 = vadd.f32 %v1242_v52, %v1128_v27  ;;  %v3288_v55 = vpop.f32.mrb[51].mxu1  ;;  %v3617_v52 = vld [vmem:[%s4439_s5 + $0x90] sm:$0xff]  }
 0x23d   :  { %v3618_v55 = vld [vmem:[%s4439_s5 + $0x98] sm:$0xff]  }
 0x23e   :  { %v1275_v56 = vmul.f32 0.01, %v1271_v53  ;;  %v1272_v57 = vadd.f32 %v2701_v49, %v1261_v54 }
 0x240   :  { %v1279_v58 = vmax.f32 %v1271_v53, %v1275_v56  ;;  %v1276_v59 = vmul.f32 0.01, %v1272_v57  ;;  %v1503_v56 = vld [vmem:[#allocation2 + $0x30] sm:$0xff] }
 0x241   :  { %v1247_v60 = vpop.f32.mrb[52].mxu1 }
 0x242   :  { %1283 = vst.msk [vmem:[#allocation2 + $0x8] sm:$0xff] %vm44_vm2, %v1279_v58  ;;  %v1280_v61 = vmax.f32 %v1272_v57, %v1276_v59  ;;  %v3291_v62 = vpop.f32.mrb[53].mxu1  ;;  %v1613_v59 = vld [vmem:[#allocation2 + $0x31] sm:$0xff] }
 0x243   :  { %v1249_v63 = vpop.f32.mrb[54].mxu1 }
 0x244   :  { %1284 = vst.msk [vmem:[#allocation2 + $0x10] sm:$0xff] %vm44_vm2, %v1280_v61  ;;  %v1262_v1 = vadd.f32 %v1249_v63, %v1129_v37  ;;  %v3292_v2 = vpop.f32.mrb[55].mxu1 }
 0x246   :  { %v1273_v3 = vadd.f32 %v2701_v49, %v1262_v1 }
 0x248   :  { %v1277_v4 = vmul.f32 0.01, %v1273_v3 }
 0x249   :  { %v1254_v5 = vpop.f32.mrb[56].mxu1  ;;  %v1304_v9 = vld [vmem:[#allocation2 + $0x7] sm:$0xff] }
 0x24a   :  { %v1281_v6 = vmax.f32 %v1273_v3, %v1277_v4  ;;  %v1263_v7 = vadd.f32 %v1254_v5, %v1130_v45  ;;  %v3295_v8 = vpop.f32.mrb[57].mxu1  ;;  %v1287_v13 = vld [vmem:[#allocation2 + $0x6] sm:$0xff] }
 0x24b   :  { %v1257_v11 = vpop.f32.mrb[58].mxu1  ;;  %v1305_v12 = vld [vmem:[#allocation2 + $0xf] sm:$0xff]  ;;  %v1306_v24 = vld [vmem:[#allocation2 + $0x17] sm:$0xff]  ;;  %v3619_v8 = vld [vmem:[%s4441_s7 + $0x40] sm:$0xff]  }
 0x24c   :  { %v1288_v14 = vld [vmem:[#allocation2 + $0xe] sm:$0xff]  ;;  %1285 = vst.msk [vmem:[#allocation2 + $0x20] sm:$0xff] %vm44_vm2, %v1281_v6  ;;  %v1274_v15 = vadd.f32 %v2701_v49, %v1263_v7  ;;  %v3296_v16 = vpop.f32.mrb[59].mxu1  ;;  %v1310_v17 = vpack.c.bf16 %v1305_v12, %v1304_v9  ;;  %v1289_v27 = vld [vmem:[#allocation2 + $0x16] sm:$0xff]  ;;  %v3620_v9 = vld [vmem:[%s4441_s7] sm:$0xff]  }
 0x24d   :  { %v1293_v18 = vpack.c.bf16 %v1288_v14, %v1287_v13  ;;  %v1499_v40 = vld [vmem:[#allocation2 + $0x10] sm:$0xff]  ;;  %v1498_v43 = vld [vmem:[#allocation2 + $0x8] sm:$0xff]  ;;  %v3625_v14 = vld [vmem:[%s4441_s7 + $0x58] sm:$0xff]  }
 0x24e   :  { %v1278_v20 = vmul.f32 0.01, %v1274_v15  ;;  %3306 = vmatmul.mubr.msk.bf16.vlgmr.msra.gmra.mrb[60].mxu0 %vm44_vm2, %v1310_v17  ;;  %v1608_v41 = vld [vmem:[#allocation2 + $0x9] sm:$0xff]  ;;  %v1609_v42 = vld [vmem:[#allocation2 + $0x11] sm:$0xff]  ;;  %v1504_v45 = vpack.c.bf16 %v1499_v40, %v1498_v43  ;;  %v3627_v16 = vld [vmem:[%s4441_s7 + $0x60] sm:$0xff]  }
 0x24f   :  { %3326 = vmatmul.mubr.msk.bf16.vlgmr.msra.gmra.mrb[60].mxu1 %vm44_vm2, %v1293_v18  ;;  %3338 = vmatpush3.bf16.msra.mxu0 %v3607_v10  ;;  %v1614_v46 = vpack.c.bf16 %v1609_v42, %v1608_v41  ;;  %v1718_v62 = vld [vmem:[#allocation2 + $0xa] sm:$0xff]  ;;  %v1719_v63 = vld [vmem:[#allocation2 + $0x12] sm:$0xff]  ;;  %v3628_v17 = vld [vmem:[%s4441_s7 + $0x20] sm:$0xff]  }
 0x250   :  { %3309 = vmatprep.mubr.msk.bf16.mxu0 %vm3660_vm1, %v3659_v0  ;;  %v1282_v22 = vmax.f32 %v1274_v15, %v1278_v20  ;;  %3339 = vmatprep.subr.bf16.mxu0 %v3659_v0  ;;  %v1724_v1 = vpack.c.bf16 %v1719_v63, %v1718_v62  ;;  %v1723_v6 = vld [vmem:[#allocation2 + $0x32] sm:$0xff]  ;;  %v3621_v10 = vld [vmem:[%s4441_s7 + $0x48] sm:$0xff]  }
 0x251   :  { %3329 = vmatprep.mubr.msk.bf16.mxu1 %vm3660_vm1, %v3659_v0  ;;  %3358 = vmatpush3.bf16.msra.mxu1 %v3609_v19  ;;  %v3622_v11 = vld [vmem:[%s4441_s7 + $0x8] sm:$0xff]   ;;  %v3623_v12 = vld [vmem:[%s4441_s7 + $0x50] sm:$0xff]   ;;  %v3626_v15 = vld [vmem:[%s4441_s7 + $0x18] sm:$0xff]  }
 0x252   :  { %1286 = vst.msk [vmem:[#allocation2 + $0x28] sm:$0xff] %vm44_vm2, %v1282_v22  ;;  %3359 = vmatprep.subr.bf16.mxu1 %v3659_v0  ;;  %v3624_v13 = vld [vmem:[%s4441_s7 + $0x10] sm:$0xff]   ;;  %v3629_v18 = vld [vmem:[%s4441_s7 + $0x68] sm:$0xff]   ;;  %v3633_v22 = vld [vmem:[%s4441_s7 + $0x78] sm:$0xff]  }
 0x253   :  { %3340 = vmatpush3.bf16.msra.mxu0 %v3608_v21  ;;  %v1307_v26 = vld [vmem:[#allocation2 + $0x1f] sm:$0xff]  ;;  %v3630_v19 = vld [vmem:[%s4441_s7 + $0x28] sm:$0xff]   ;;  %v3631_v20 = vld [vmem:[%s4441_s7 + $0x70] sm:$0xff]  }
 0x254   :  { %v1290_v28 = vld [vmem:[#allocation2 + $0x1e] sm:$0xff]  ;;  %v1311_v29 = vpack.c.bf16 %v1307_v26, %v1306_v24  ;;  %3341 = vmatprep.subr.bf16.mxu0 %v3659_v0  ;;  %v3632_v21 = vld [vmem:[%s4441_s7 + $0x30] sm:$0xff]  }
 0x255   :  { %v1294_v30 = vpack.c.bf16 %v1290_v28, %v1289_v27  ;;  %3360 = vmatpush3.bf16.msra.mxu1 %v3611_v23  ;;  %v1501_v49 = vld [vmem:[#allocation2 + $0x20] sm:$0xff]  ;;  %v3634_v23 = vld [vmem:[%s4441_s7 + $0x38] sm:$0xff]  }
 0x256   :  { %3310 = vmatmul.mubr.msk.bf16.gmra.mrb[64].mxu0 %vm44_vm2, %v1311_v29  ;;  %3361 = vmatprep.subr.bf16.mxu1 %v3659_v0  ;;  %v1610_v51 = vld [vmem:[#allocation2 + $0x19] sm:$0xff]  ;;  %v1505_v53 = vpack.c.bf16 %v1501_v49, %v1500_v48 }
 0x257   :  { %3330 = vmatmul.mubr.msk.bf16.gmra.mrb[64].mxu1 %vm44_vm2, %v1294_v30  ;;  %3342 = vmatpush3.bf16.msra.mxu0 %v3610_v25  ;;  %v1720_v3 = vld [vmem:[#allocation2 + $0x1a] sm:$0xff] }
 0x258   :  { %3313 = vmatprep.mubr.msk.bf16.mxu0 %vm3660_vm1, %v3659_v0  ;;  %3333 = vmatprep.mubr.msk.bf16.mxu1 %vm3660_vm1, %v3659_v0 }
 0x259   :  { %v1308_v34 = vld [vmem:[#allocation2 + $0x27] sm:$0xff]  ;;  %v1309_v35 = vld [vmem:[#allocation2 + $0x2f] sm:$0xff]  ;;  %3362 = vmatpush3.bf16.msra.mxu1 %v3612_v31  ;;  %3343 = vmatprep.subr.bf16.mxu0 %v3659_v0 }
 0x25a   :  { %v1291_v36 = vld [vmem:[#allocation2 + $0x26] sm:$0xff]  ;;  %v1292_v37 = vld [vmem:[#allocation2 + $0x2e] sm:$0xff]  ;;  %3363 = vmatprep.subr.bf16.mxu1 %v3659_v0  ;;  %v1312_v38 = vpack.c.bf16 %v1309_v35, %v1308_v34 }
 0x25b   :  { %3344 = vmatpush3.bf16.msra.mxu0 %v3613_v32  ;;  %v1295_v39 = vpack.c.bf16 %v1292_v37, %v1291_v36  ;;  %v1611_v50 = vld [vmem:[#allocation2 + $0x21] sm:$0xff]  ;;  %v1612_v58 = vld [vmem:[#allocation2 + $0x29] sm:$0xff] }
 0x25c   :  { %3377 = vmatprep.subr.bf16.mxu0 %v3659_v0  ;;  %v1615_v54 = vpack.c.bf16 %v1611_v50, %v1610_v51  ;;  %v1502_v57 = vld [vmem:[#allocation2 + $0x28] sm:$0xff]  ;;  %v1616_v61 = vpack.c.bf16 %v1613_v59, %v1612_v58 }
 0x25d   :  { %3364 = vmatpush3.bf16.msra.mxu1 %v3614_v33  ;;  %v1506_v60 = vpack.c.bf16 %v1503_v56, %v1502_v57  ;;  %v1721_v2 = vld [vmem:[#allocation2 + $0x22] sm:$0xff]  ;;  %v1722_v5 = vld [vmem:[#allocation2 + $0x2a] sm:$0xff] }
 0x25e   :  { %3314 = vmatmul.mubr.msk.bf16.gmra.mrb[68].mxu0 %vm44_vm2, %v1312_v38  ;;  %3397 = vmatprep.subr.bf16.mxu1 %v3659_v0  ;;  %v1725_v4 = vpack.c.bf16 %v1721_v2, %v1720_v3  ;;  %v1726_v7 = vpack.c.bf16 %v1723_v6, %v1722_v5 }
 0x25f   :  { %3334 = vmatmul.mubr.msk.bf16.gmra.mrb[68].mxu1 %vm44_vm2, %v1295_v39  ;;  %3345 = vmatprep.mubr.msk.bf16.mxu0 %vm3660_vm1, %v3659_v0 }
 0x260   :  { %3365 = vmatprep.mubr.msk.bf16.mxu1 %vm3660_vm1, %v3659_v0 }
 0x266   :  { %3346 = vmatmul.mubr.msk.bf16.vlgmr.msra.gmra.mrb[72].mxu0 %vm44_vm2, %v1504_v45 }
 0x267   :  { %3366 = vmatmul.mubr.msk.bf16.vlgmr.msra.gmra.mrb[72].mxu1 %vm44_vm2, %v1614_v46  ;;  %3378 = vmatpush3.bf16.msra.mxu0 %v3615_v44 }
 0x268   :  { %3349 = vmatprep.mubr.msk.bf16.mxu0 %vm3660_vm1, %v3659_v0  ;;  %3379 = vmatprep.subr.bf16.mxu0 %v3659_v0 }
 0x269   :  { %3369 = vmatprep.mubr.msk.bf16.mxu1 %vm3660_vm1, %v3659_v0  ;;  %3398 = vmatpush3.bf16.msra.mxu1 %v3619_v8 }
 0x26a   :  { %3399 = vmatprep.subr.bf16.mxu1 %v3659_v0 }
 0x26b   :  { %3380 = vmatpush3.bf16.msra.mxu0 %v3616_v47 }
 0x26c   :  { %3381 = vmatprep.subr.bf16.mxu0 %v3659_v0 }
 0x26d   :  { %3400 = vmatpush3.bf16.msra.mxu1 %v3621_v10 }
 0x26e   :  { %3350 = vmatmul.mubr.msk.bf16.gmra.mrb[76].mxu0 %vm44_vm2, %v1505_v53  ;;  %3401 = vmatprep.subr.bf16.mxu1 %v3659_v0 }
 0x26f   :  { %3370 = vmatmul.mubr.msk.bf16.gmra.mrb[76].mxu1 %vm44_vm2, %v1615_v54  ;;  %3382 = vmatpush3.bf16.msra.mxu0 %v3617_v52 }
 0x270   :  { %3353 = vmatprep.mubr.msk.bf16.mxu0 %vm3660_vm1, %v3659_v0  ;;  %3373 = vmatprep.mubr.msk.bf16.mxu1 %vm3660_vm1, %v3659_v0 }
 0x271   :  { %3383 = vmatprep.subr.bf16.mxu0 %v3659_v0  ;;  %3402 = vmatpush3.bf16.msra.mxu1 %v3623_v12 }
 0x272   :  { %3403 = vmatprep.subr.bf16.mxu1 %v3659_v0 }
 0x273   :  { %3384 = vmatpush3.bf16.msra.mxu0 %v3618_v55 }
 0x274   :  { %3425 = vmatprep.subr.bf16.mxu0 %v3659_v0 }
 0x275   :  { %3404 = vmatpush3.bf16.msra.mxu1 %v3625_v14 }
 0x276   :  { %3354 = vmatmul.mubr.msk.bf16.gmra.mrb[80].mxu0 %vm44_vm2, %v1506_v60  ;;  %3405 = vmatprep.subr.bf16.mxu1 %v3659_v0 }
 0x277   :  { %3374 = vmatmul.mubr.msk.bf16.gmra.mrb[80].mxu1 %vm44_vm2, %v1616_v61  ;;  %3385 = vmatprep.mubr.msk.bf16.mxu0 %vm3660_vm1, %v3659_v0 }
 0x278   :  { %3413 = vmatprep.mubr.msk.bf16.mxu1 %vm3660_vm1, %v3659_v0 }
 0x279   :  { %3406 = vmatpush3.bf16.msra.mxu1 %v3627_v16 }
 0x27a   :  { %3407 = vmatprep.subr.bf16.mxu1 %v3659_v0 }
 0x27d   :  { %3408 = vmatpush3.bf16.msra.mxu1 %v3629_v18 }
 0x27e   :  { %3386 = vmatmul.mubr.msk.bf16.vlgmr.msra.gmra.mrb[84].mxu0 %vm44_vm2, %v1724_v1  ;;  %3409 = vmatprep.subr.bf16.mxu1 %v3659_v0 }
 0x27f   :  { %3389 = vmatprep.mubr.msk.bf16.mxu0 %vm3660_vm1, %v3659_v0  ;;  %3426 = vmatpush3.bf16.msra.mxu0 %v3620_v9 }
 0x280   :  { %3427 = vmatprep.subr.bf16.mxu0 %v3659_v0 }
 0x281   :  { %3410 = vmatpush3.bf16.msra.mxu1 %v3631_v20 }
 0x282   :  { %3411 = vmatprep.subr.bf16.mxu1 %v3659_v0 }
 0x283   :  { %3428 = vmatpush3.bf16.msra.mxu0 %v3622_v11 }
 0x284   :  { %3429 = vmatprep.subr.bf16.mxu0 %v3659_v0 }
 0x285   :  { %3412 = vmatpush3.bf16.msra.mxu1 %v3633_v22  ;;  %v2769_v22 = vld [vmem:[%s4442_s6] ss:$0 sm:$0xff] }
 0x286   :  { %3390 = vmatmul.mubr.msk.bf16.gmra.mrb[88].mxu0 %vm44_vm2, %v1725_v4  ;;  %3453 = vmatprep.subr.bf16.mxu1 %v3659_v0 }
 0x287   :  { %3393 = vmatprep.mubr.msk.bf16.mxu0 %vm3660_vm1, %v3659_v0  ;;  %3430 = vmatpush3.bf16.msra.mxu0 %v3624_v13 }
 0x288   :  { %3431 = vmatprep.subr.bf16.mxu0 %v3659_v0 }
 0x28b   :  { %3432 = vmatpush3.bf16.msra.mxu0 %v3626_v15 }
 0x28c   :  { %3433 = vmatprep.subr.bf16.mxu0 %v3659_v0 }
 0x28e   :  { %3394 = vmatmul.mubr.msk.bf16.gmra.mrb[92].mxu0 %vm44_vm2, %v1726_v7 }
 0x28f   :  { %3441 = vmatprep.mubr.msk.bf16.mxu0 %vm3660_vm1, %v3659_v0  ;;  %3434 = vmatpush3.bf16.msra.mxu0 %v3628_v17 }
 0x290   :  { %3435 = vmatprep.subr.bf16.mxu0 %v3659_v0 }
 0x293   :  { %3436 = vmatpush3.bf16.msra.mxu0 %v3630_v19 }
 0x294   :  { %3437 = vmatprep.subr.bf16.mxu0 %v3659_v0 }
 0x297   :  { %3438 = vmatpush3.bf16.msra.mxu0 %v3632_v21 }
 0x298   :  { %3439 = vmatprep.subr.bf16.mxu0 %v3659_v0 }
 0x29b   :  { %3440 = vmatpush3.bf16.msra.mxu0 %v3634_v23 }
 0x29c   :  { %3481 = vmatprep.subr.bf16.mxu0 %v3659_v0 }
 0x321   :  { %v1389_v24 = vpop.f32.mrb[60].mxu0 }
 0x322   :  { %v1477_v25 = vpop.f32.mrb[60].mxu1  ;;  %v3307_v27 = vpop.f32.mrb[61].mxu0 }
 0x323   :  { %v1478_v26 = vadd.f32 %v1477_v25, %v1389_v24  ;;  %v3327_v28 = vpop.f32.mrb[61].mxu1  ;;  %v1392_v29 = vpop.f32.mrb[62].mxu0 }
 0x324   :  { %v1480_v30 = vpop.f32.mrb[62].mxu1  ;;  %v3308_v32 = vpop.f32.mrb[63].mxu0 }
 0x325   :  { %v1481_v31 = vadd.f32 %v1480_v30, %v1392_v29  ;;  %v3328_v33 = vpop.f32.mrb[63].mxu1 }
 0x329   :  { %v1397_v34 = vpop.f32.mrb[64].mxu0 }
 0x32a   :  { %v1485_v35 = vpop.f32.mrb[64].mxu1  ;;  %v3311_v36 = vpop.f32.mrb[65].mxu0 }
 0x32b   :  { %v3331_v37 = vpop.f32.mrb[65].mxu1  ;;  %v1399_v38 = vpop.f32.mrb[66].mxu0 }
 0x32c   :  { %v1487_v39 = vpop.f32.mrb[66].mxu1  ;;  %v3312_v41 = vpop.f32.mrb[67].mxu0 }
 0x32d   :  { %v1488_v40 = vadd.f32 %v1487_v39, %v1399_v38  ;;  %v3332_v42 = vpop.f32.mrb[67].mxu1  ;;  %v3635_v38 = vld [vmem:[%s4441_s7 + $0x80] sm:$0xff]  }
 0x32e   :  { %v3636_v39 = vld [vmem:[%s4441_s7 + $0xc0] sm:$0xff]  }
 0x331   :  { %v1404_v43 = vpop.f32.mrb[68].mxu0 }
 0x332   :  { %v1492_v44 = vpop.f32.mrb[68].mxu1  ;;  %v3315_v46 = vpop.f32.mrb[69].mxu0 }
 0x333   :  { %v1493_v45 = vadd.f32 %v1492_v44, %v1404_v43  ;;  %v3335_v47 = vpop.f32.mrb[69].mxu1  ;;  %v1407_v48 = vpop.f32.mrb[70].mxu0 }
 0x334   :  { %v1495_v49 = vpop.f32.mrb[70].mxu1  ;;  %v3316_v50 = vpop.f32.mrb[71].mxu0 }
 0x335   :  { %v3336_v51 = vpop.f32.mrb[71].mxu1  ;;  %v3637_v49 = vld [vmem:[%s4441_s7 + $0x88] sm:$0xff]  }
 0x336   :  { %v3638_v50 = vld [vmem:[%s4441_s7 + $0xc8] sm:$0xff]  }
 0x339   :  { %v1583_v52 = vpop.f32.mrb[72].mxu0 }
 0x33a   :  { %v1693_v53 = vpop.f32.mrb[72].mxu1  ;;  %v1604_v54 = vadd.f32 %v1583_v52, %v1478_v26  ;;  %v3347_v55 = vpop.f32.mrb[73].mxu0 }
 0x33b   :  { %v3367_v56 = vpop.f32.mrb[73].mxu1  ;;  %v1586_v57 = vpop.f32.mrb[74].mxu0  ;;  %v3640_v55 = vld [vmem:[%s4441_s7 + $0xd0] sm:$0xff]  }
 0x33c   :  { %v1696_v58 = vpop.f32.mrb[74].mxu1  ;;  %v1714_v59 = vadd.f32 %v1693_v53, %v1604_v54  ;;  %v1605_v60 = vadd.f32 %v1586_v57, %v1481_v31  ;;  %v3348_v61 = vpop.f32.mrb[75].mxu0  ;;  %v3639_v54 = vld [vmem:[%s4441_s7 + $0x90] sm:$0xff]  }
 0x33d   :  { %v3368_v62 = vpop.f32.mrb[75].mxu1  ;;  %v3641_v61 = vld [vmem:[%s4441_s7 + $0x98] sm:$0xff]  }
 0x33e   :  { %v1715_v63 = vadd.f32 %v1696_v58, %v1605_v60  ;;  %v3642_v62 = vld [vmem:[%s4441_s7 + $0xd8] sm:$0xff]  }
 0x341   :  { %v1591_v1 = vpop.f32.mrb[76].mxu0 }
 0x342   :  { %v1701_v2 = vpop.f32.mrb[76].mxu1  ;;  %v3351_v3 = vpop.f32.mrb[77].mxu0 }
 0x343   :  { %v3371_v4 = vpop.f32.mrb[77].mxu1  ;;  %v1593_v5 = vpop.f32.mrb[78].mxu0 }
 0x344   :  { %v1703_v6 = vpop.f32.mrb[78].mxu1  ;;  %v1606_v7 = vadd.f32 %v1593_v5, %v1488_v40  ;;  %v3352_v8 = vpop.f32.mrb[79].mxu0  ;;  %v3643_v4 = vld [vmem:[%s4441_s7 + $0xa0] sm:$0xff]  }
 0x345   :  { %v3372_v9 = vpop.f32.mrb[79].mxu1  ;;  %v3644_v5 = vld [vmem:[%s4441_s7 + $0xe0] sm:$0xff]   ;;  %v3645_v8 = vld [vmem:[%s4441_s7 + $0xa8] sm:$0xff]  }
 0x346   :  { %v1716_v10 = vadd.f32 %v1703_v6, %v1606_v7  ;;  %v3646_v9 = vld [vmem:[%s4441_s7 + $0xe8] sm:$0xff]  }
 0x349   :  { %v1598_v11 = vpop.f32.mrb[80].mxu0 }
 0x34a   :  { %v1708_v12 = vpop.f32.mrb[80].mxu1  ;;  %v1607_v13 = vadd.f32 %v1598_v11, %v1493_v45  ;;  %v3355_v14 = vpop.f32.mrb[81].mxu0  ;;  %v3648_v11 = vld [vmem:[%s4441_s7 + $0xf0] sm:$0xff]  }
 0x34b   :  { %v3375_v15 = vpop.f32.mrb[81].mxu1  ;;  %v1601_v16 = vpop.f32.mrb[82].mxu0 }
 0x34c   :  { %v1711_v17 = vpop.f32.mrb[82].mxu1  ;;  %v1717_v18 = vadd.f32 %v1708_v12, %v1607_v13  ;;  %v3356_v19 = vpop.f32.mrb[83].mxu0  ;;  %v3649_v12 = vld [vmem:[%s4441_s7 + $0xb8] sm:$0xff]   ;;  %v3651_v16 = vld [vmem:[%s4441_s7 + $0x100] sm:$0xff]  }
 0x34d   :  { %v3376_v20 = vpop.f32.mrb[83].mxu1  ;;  %v3650_v13 = vld [vmem:[%s4441_s7 + $0xf8] sm:$0xff]  }
 0x34e   :  { %v2102_v19 = vld [vmem:[#allocation3 + $0x18] sm:$0xff] }
 0x351   :  { %v1803_v21 = vpop.f32.mrb[84].mxu0 }
 0x352   :  { %v1824_v23 = vadd.f32 %v1803_v21, %v1714_v59  ;;  %v3387_v24 = vpop.f32.mrb[85].mxu0 }
 0x353   :  { %v1806_v25 = vpop.f32.mrb[86].mxu0 }
 0x354   :  { %v4277_v26 = vadd.f32 %v2769_v22, %v1824_v23  ;;  %v1825_v27 = vadd.f32 %v1806_v25, %v1715_v63  ;;  %v3388_v28 = vpop.f32.mrb[87].mxu0  ;;  %v3654_v25 = vld [vmem:[%s4441_s7 + $0x118] sm:$0xff]  }
 0x355   :  { %v2238_v28 = vld [vmem:[#allocation3 + $0x31] sm:$0xff] }
 0x356   :  { %1839 = vst [vmem:[#allocation3 + $0x8] sm:$0xff] %v4277_v26  ;;  %v4280_v29 = vadd.f32 %v2769_v22, %v1825_v27 }
 0x358   :  { %1840 = vst [vmem:[#allocation3 + $0x10] sm:$0xff] %v4280_v29  ;;  %v2106_v30 = vpack.c.bf16 %v4280_v29, %v4277_v26  ;;  %v2105_v26 = vld [vmem:[#allocation3 + $0x30] sm:$0xff]  ;;  %v3655_v29 = vld [vmem:[%s4441_s7 + $0x120] sm:$0xff]  }
 0x359   :  { %v1811_v31 = vpop.f32.mrb[88].mxu0 }
 0x35a   :  { %v3391_v32 = vpop.f32.mrb[89].mxu0 }
 0x35b   :  { %v1813_v33 = vpop.f32.mrb[90].mxu0  ;;  %v3656_v32 = vld [vmem:[%s4441_s7 + $0x128] sm:$0xff]  }
 0x35c   :  { %v1826_v34 = vadd.f32 %v1813_v33, %v1716_v10  ;;  %v3392_v35 = vpop.f32.mrb[91].mxu0  ;;  %v3647_v10 = vld [vmem:[%s4441_s7 + $0xb0] sm:$0xff]  }
 0x35d   :  { %v1868_v37 = vld [vmem:[#allocation3 + $0x7] sm:$0xff]  ;;  %v3657_v33 = vld [vmem:[%s4441_s7 + $0x130] sm:$0xff]  }
 0x35e   :  { %v4285_v36 = vadd.f32 %v2769_v22, %v1826_v34  ;;  %v1843_v41 = vld [vmem:[#allocation3 + $0x6] sm:$0xff]  ;;  %v3658_v34 = vld [vmem:[%s4441_s7 + $0x138] sm:$0xff]  }
 0x35f   :  { %v1869_v40 = vld [vmem:[#allocation3 + $0xf] sm:$0xff]  ;;  %v1870_v53 = vld [vmem:[#allocation3 + $0x17] sm:$0xff] }
 0x360   :  { %v1844_v42 = vld [vmem:[#allocation3 + $0xe] sm:$0xff]  ;;  %1841 = vst [vmem:[#allocation3 + $0x20] sm:$0xff] %v4285_v36  ;;  %v1874_v43 = vpack.c.bf16 %v1869_v40, %v1868_v37  ;;  %v1845_v57 = vld [vmem:[#allocation3 + $0x16] sm:$0xff]  ;;  %v2107_v23 = vpack.c.bf16 %v4285_v36, %v2102_v19 }
 0x361   :  { %v1849_v44 = vpack.c.bf16 %v1844_v42, %v1843_v41  ;;  %v1818_v45 = vpop.f32.mrb[92].mxu0  ;;  %v2233_v14 = vld [vmem:[#allocation3 + $0x9] sm:$0xff]  ;;  %v2234_v15 = vld [vmem:[#allocation3 + $0x11] sm:$0xff] }
 0x362   :  { %v1827_v46 = vadd.f32 %v1818_v45, %v1717_v18  ;;  %v3395_v47 = vpop.f32.mrb[93].mxu0  ;;  %3414 = vmatmul.mubr.bf16.vlgmr.msra.gmra.mrb[84].mxu1 %v1874_v43  ;;  %v2239_v17 = vpack.c.bf16 %v2234_v15, %v2233_v14  ;;  %v3652_v18 = vld [vmem:[%s4441_s7 + $0x108] sm:$0xff]   ;;  %v2367_v36 = vld [vmem:[#allocation3 + $0x12] sm:$0xff] }
 0x363   :  { %3442 = vmatmul.mubr.bf16.vlgmr.msra.gmra.mrb[96].mxu0 %v1849_v44  ;;  %3454 = vmatpush3.bf16.msra.mxu1 %v3635_v38  ;;  %v1821_v48 = vpop.f32.mrb[94].mxu0  ;;  %v2366_v35 = vld [vmem:[#allocation3 + $0xa] sm:$0xff]  ;;  %v2371_v42 = vld [vmem:[#allocation3 + $0x32] sm:$0xff] }
 0x364   :  { %3482 = vmatpush3.bf16.msra.mxu0 %v3636_v39  ;;  %v4300_v51 = vadd.f32 %v2769_v22, %v1827_v46  ;;  %v3396_v52 = vpop.f32.mrb[95].mxu0  ;;  %3455 = vmatprep.subr.bf16.mxu1 %v3659_v0  ;;  %v3653_v22 = vld [vmem:[%s4441_s7 + $0x110] sm:$0xff]   ;;  %v2372_v37 = vpack.c.bf16 %v2367_v36, %v2366_v35 }
 0x365   :  { %3483 = vmatprep.subr.bf16.mxu0 %v3659_v0  ;;  %3417 = vmatprep.mubr.msk.bf16.mxu1 %vm3660_vm1, %v3659_v0 }
 0x366   :  { %3445 = vmatprep.mubr.msk.bf16.mxu0 %vm3660_vm1, %v3659_v0  ;;  %1842 = vst [vmem:[#allocation3 + $0x28] sm:$0xff] %v4300_v51 }
 0x367   :  { %3456 = vmatpush3.bf16.msra.mxu1 %v3637_v49  ;;  %v1871_v56 = vld [vmem:[#allocation3 + $0x1f] sm:$0xff] }
 0x368   :  { %3484 = vmatpush3.bf16.msra.mxu0 %v3638_v50  ;;  %v1846_v58 = vld [vmem:[#allocation3 + $0x1e] sm:$0xff]  ;;  %3457 = vmatprep.subr.bf16.mxu1 %v3659_v0  ;;  %v1875_v59 = vpack.c.bf16 %v1871_v56, %v1870_v53 }
 0x369   :  { %3485 = vmatprep.subr.bf16.mxu0 %v3659_v0  ;;  %v1850_v60 = vpack.c.bf16 %v1846_v58, %v1845_v57  ;;  %v2235_v21 = vld [vmem:[#allocation3 + $0x19] sm:$0xff] }
 0x36a   :  { %3418 = vmatmul.mubr.bf16.gmra.mrb[88].mxu1 %v1875_v59  ;;  %v2368_v39 = vld [vmem:[#allocation3 + $0x1a] sm:$0xff] }
 0x36b   :  { %3446 = vmatmul.mubr.bf16.gmra.mrb[100].mxu0 %v1850_v60  ;;  %3458 = vmatpush3.bf16.msra.mxu1 %v3639_v54 }
 0x36c   :  { %3486 = vmatpush3.bf16.msra.mxu0 %v3640_v55  ;;  %3459 = vmatprep.subr.bf16.mxu1 %v3659_v0 }
 0x36d   :  { %3487 = vmatprep.subr.bf16.mxu0 %v3659_v0  ;;  %3421 = vmatprep.mubr.msk.bf16.mxu1 %vm3660_vm1, %v3659_v0  ;;  %v1872_v63 = vld [vmem:[#allocation3 + $0x27] sm:$0xff]  ;;  %v1873_v1 = vld [vmem:[#allocation3 + $0x2f] sm:$0xff] }
 0x36e   :  { %3449 = vmatprep.mubr.msk.bf16.mxu0 %vm3660_vm1, %v3659_v0  ;;  %v1847_v2 = vld [vmem:[#allocation3 + $0x26] sm:$0xff]  ;;  %v1848_v3 = vld [vmem:[#allocation3 + $0x2e] sm:$0xff]  ;;  %v1876_v6 = vpack.c.bf16 %v1873_v1, %v1872_v63 }
 0x36f   :  { %3460 = vmatpush3.bf16.msra.mxu1 %v3641_v61  ;;  %v1851_v7 = vpack.c.bf16 %v1848_v3, %v1847_v2  ;;  %v2236_v20 = vld [vmem:[#allocation3 + $0x21] sm:$0xff]  ;;  %v2237_v27 = vld [vmem:[#allocation3 + $0x29] sm:$0xff] }
 0x370   :  { %3488 = vmatpush3.bf16.msra.mxu0 %v3642_v62  ;;  %3461 = vmatprep.subr.bf16.mxu1 %v3659_v0  ;;  %v2240_v24 = vpack.c.bf16 %v2236_v20, %v2235_v21  ;;  %v2241_v31 = vpack.c.bf16 %v2238_v28, %v2237_v27  ;;  %v2369_v38 = vld [vmem:[#allocation3 + $0x22] sm:$0xff]  ;;  %v2370_v41 = vld [vmem:[#allocation3 + $0x2a] sm:$0xff] }
 0x371   :  { %3489 = vmatprep.subr.bf16.mxu0 %v3659_v0  ;;  %v2373_v40 = vpack.c.bf16 %v2369_v38, %v2368_v39  ;;  %v2374_v43 = vpack.c.bf16 %v2371_v42, %v2370_v41  ;;  %v2874_v41 = vld [vmem:[%s4443_s8] ss:$0 sm:$0xff] }
 0x372   :  { %3422 = vmatmul.mubr.bf16.gmra.mrb[92].mxu1 %v1876_v6 }
 0x373   :  { %3450 = vmatmul.mubr.bf16.gmra.mrb[104].mxu0 %v1851_v7  ;;  %3462 = vmatpush3.bf16.msra.mxu1 %v3643_v4 }
 0x374   :  { %3490 = vmatpush3.bf16.msra.mxu0 %v3644_v5  ;;  %3463 = vmatprep.subr.bf16.mxu1 %v3659_v0 }
 0x375   :  { %3491 = vmatprep.subr.bf16.mxu0 %v3659_v0  ;;  %3469 = vmatprep.mubr.msk.bf16.mxu1 %vm3660_vm1, %v3659_v0 }
 0x376   :  { %3497 = vmatprep.mubr.msk.bf16.mxu0 %vm3660_vm1, %v3659_v0 }
 0x377   :  { %3464 = vmatpush3.bf16.msra.mxu1 %v3645_v8 }
 0x378   :  { %3492 = vmatpush3.bf16.msra.mxu0 %v3646_v9  ;;  %3465 = vmatprep.subr.bf16.mxu1 %v3659_v0 }
 0x379   :  { %3493 = vmatprep.subr.bf16.mxu0 %v3659_v0 }
 0x37b   :  { %3466 = vmatpush3.bf16.msra.mxu1 %v3647_v10 }
 0x37c   :  { %3494 = vmatpush3.bf16.msra.mxu0 %v3648_v11  ;;  %3467 = vmatprep.subr.bf16.mxu1 %v3659_v0 }
 0x37d   :  { %3495 = vmatprep.subr.bf16.mxu0 %v3659_v0 }
 0x37f   :  { %3468 = vmatpush3.bf16.msra.mxu1 %v3649_v12 }
 0x380   :  { %3496 = vmatpush3.bf16.msra.mxu0 %v3650_v13  ;;  %3509 = vmatprep.subr.bf16.mxu1 %v3659_v0 }
 0x382   :  { %3470 = vmatmul.mubr.bf16.vlgmr.msra.gmra.mrb[96].mxu1 %v2106_v30  ;;  %v2108_v30 = vpack.c.bf16 %v2105_v26, %v4300_v51 }
 0x383   :  { %3498 = vmatmul.mubr.bf16.vlgmr.msra.gmra.mrb[108].mxu0 %v2239_v17  ;;  %3510 = vmatpush3.bf16.msra.mxu1 %v3651_v16 }
 0x384   :  { %3473 = vmatprep.mubr.msk.bf16.mxu1 %vm3660_vm1, %v3659_v0  ;;  %3511 = vmatprep.subr.bf16.mxu1 %v3659_v0 }
 0x385   :  { %3501 = vmatprep.mubr.msk.bf16.mxu0 %vm3660_vm1, %v3659_v0 }
 0x387   :  { %3512 = vmatpush3.bf16.msra.mxu1 %v3652_v18 }
 0x388   :  { %3513 = vmatprep.subr.bf16.mxu1 %v3659_v0 }
 0x38a   :  { %3474 = vmatmul.mubr.bf16.gmra.mrb[100].mxu1 %v2107_v23 }
 0x38b   :  { %3502 = vmatmul.mubr.bf16.gmra.mrb[112].mxu0 %v2240_v24  ;;  %3514 = vmatpush3.bf16.msra.mxu1 %v3653_v22 }
 0x38c   :  { %3477 = vmatprep.mubr.msk.bf16.mxu1 %vm3660_vm1, %v3659_v0  ;;  %3515 = vmatprep.subr.bf16.mxu1 %v3659_v0 }
 0x38d   :  { %3505 = vmatprep.mubr.msk.bf16.mxu0 %vm3660_vm1, %v3659_v0 }
 0x38f   :  { %3516 = vmatpush3.bf16.msra.mxu1 %v3654_v25 }
 0x390   :  { %3517 = vmatprep.subr.bf16.mxu1 %v3659_v0 }
 0x392   :  { %3478 = vmatmul.mubr.bf16.gmra.mrb[104].mxu1 %v2108_v30 }
 0x393   :  { %3506 = vmatmul.mubr.bf16.gmra.mrb[116].mxu0 %v2241_v31  ;;  %3518 = vmatpush3.bf16.msra.mxu1 %v3655_v29 }
 0x394   :  { %3525 = vmatprep.mubr.msk.bf16.mxu1 %vm3660_vm1, %v3659_v0  ;;  %3519 = vmatprep.subr.bf16.mxu1 %v3659_v0 }
 0x397   :  { %3520 = vmatpush3.bf16.msra.mxu1 %v3656_v32 }
 0x398   :  { %3521 = vmatprep.subr.bf16.mxu1 %v3659_v0 }
 0x39b   :  { %3522 = vmatpush3.bf16.msra.mxu1 %v3657_v33 }
 0x39c   :  { %3523 = vmatprep.subr.bf16.mxu1 %v3659_v0 }
 0x39f   :  { %3524 = vmatpush3.bf16.msra.mxu1 %v3658_v34 }
 0x3a2   :  { %3526 = vmatmul.mubr.bf16.vlgmr.msra.gmra.mrb[108].mxu1 %v2372_v37 }
 0x3a3   :  { %3529 = vmatprep.mubr.msk.bf16.mxu1 %vm3660_vm1, %v3659_v0 }
 0x3aa   :  { %3530 = vmatmul.mubr.bf16.gmra.mrb[112].mxu1 %v2373_v40 }
 0x3ab   :  { %3533 = vmatprep.mubr.msk.bf16.mxu1 %vm3660_vm1, %v3659_v0 }
 0x3b2   :  { %3534 = vmatmul.mubr.bf16.gmra.mrb[116].mxu1 %v2374_v43 }
 0x435   :  { %v1976_v44 = vpop.f32.mrb[84].mxu1 }
 0x436   :  { %v2079_v45 = vpop.f32.mrb[96].mxu0  ;;  %v3415_v47 = vpop.f32.mrb[85].mxu1 }
 0x437   :  { %v2080_v46 = vadd.f32 %v2079_v45, %v1976_v44  ;;  %v3443_v48 = vpop.f32.mrb[97].mxu0  ;;  %v1979_v49 = vpop.f32.mrb[86].mxu1 }
 0x438   :  { %v2082_v50 = vpop.f32.mrb[98].mxu0  ;;  %v3416_v52 = vpop.f32.mrb[87].mxu1 }
 0x439   :  { %v2083_v51 = vadd.f32 %v2082_v50, %v1979_v49  ;;  %v3444_v53 = vpop.f32.mrb[99].mxu0 }
 0x43d   :  { %v1984_v54 = vpop.f32.mrb[88].mxu1 }
 0x43e   :  { %v2087_v55 = vpop.f32.mrb[100].mxu0  ;;  %v3419_v56 = vpop.f32.mrb[89].mxu1 }
 0x43f   :  { %v3447_v57 = vpop.f32.mrb[101].mxu0  ;;  %v1986_v58 = vpop.f32.mrb[90].mxu1 }
 0x440   :  { %v2089_v0 = vpop.f32.mrb[102].mxu0  ;;  %v3420_v60 = vpop.f32.mrb[91].mxu1 }
 0x441   :  { %v2090_v59 = vadd.f32 %v2089_v0, %v1986_v58  ;;  %v3448_v61 = vpop.f32.mrb[103].mxu0 }
 0x445   :  { %v1991_v62 = vpop.f32.mrb[92].mxu1 }
 0x446   :  { %v2094_v63 = vpop.f32.mrb[104].mxu0  ;;  %v3423_v2 = vpop.f32.mrb[93].mxu1 }
 0x447   :  { %v2095_v1 = vadd.f32 %v2094_v63, %v1991_v62  ;;  %v3451_v3 = vpop.f32.mrb[105].mxu0  ;;  %v1994_v4 = vpop.f32.mrb[94].mxu1 }
 0x448   :  { %v2097_v5 = vpop.f32.mrb[106].mxu0  ;;  %v3424_v6 = vpop.f32.mrb[95].mxu1 }
 0x449   :  { %v3452_v7 = vpop.f32.mrb[107].mxu0 }
 0x455   :  { %v2208_v8 = vpop.f32.mrb[96].mxu1 }
 0x456   :  { %v2341_v9 = vpop.f32.mrb[108].mxu0  ;;  %v2229_v10 = vadd.f32 %v2208_v8, %v2080_v46  ;;  %v3471_v11 = vpop.f32.mrb[97].mxu1 }
 0x457   :  { %v3499_v12 = vpop.f32.mrb[109].mxu0  ;;  %v2211_v13 = vpop.f32.mrb[98].mxu1 }
 0x458   :  { %v2344_v14 = vpop.f32.mrb[110].mxu0  ;;  %v2362_v15 = vadd.f32 %v2341_v9, %v2229_v10  ;;  %v2230_v16 = vadd.f32 %v2211_v13, %v2083_v51  ;;  %v3472_v17 = vpop.f32.mrb[99].mxu1 }
 0x459   :  { %v3500_v18 = vpop.f32.mrb[111].mxu0 }
 0x45a   :  { %v2363_v19 = vadd.f32 %v2344_v14, %v2230_v16 }
 0x45d   :  { %v2216_v20 = vpop.f32.mrb[100].mxu1 }
 0x45e   :  { %v2349_v21 = vpop.f32.mrb[112].mxu0  ;;  %v3475_v22 = vpop.f32.mrb[101].mxu1 }
 0x45f   :  { %v3503_v23 = vpop.f32.mrb[113].mxu0  ;;  %v2218_v24 = vpop.f32.mrb[102].mxu1 }
 0x460   :  { %v2351_v25 = vpop.f32.mrb[114].mxu0  ;;  %v2231_v26 = vadd.f32 %v2218_v24, %v2090_v59  ;;  %v3476_v27 = vpop.f32.mrb[103].mxu1 }
 0x461   :  { %v3504_v28 = vpop.f32.mrb[115].mxu0 }
 0x462   :  { %v2364_v29 = vadd.f32 %v2351_v25, %v2231_v26 }
 0x465   :  { %v2223_v30 = vpop.f32.mrb[104].mxu1 }
 0x466   :  { %v2356_v31 = vpop.f32.mrb[116].mxu0  ;;  %v2232_v32 = vadd.f32 %v2223_v30, %v2095_v1  ;;  %v3479_v33 = vpop.f32.mrb[105].mxu1 }
 0x467   :  { %v3507_v34 = vpop.f32.mrb[117].mxu0  ;;  %v2226_v35 = vpop.f32.mrb[106].mxu1 }
 0x468   :  { %v2359_v36 = vpop.f32.mrb[118].mxu0  ;;  %v2365_v37 = vadd.f32 %v2356_v31, %v2232_v32  ;;  %v3480_v38 = vpop.f32.mrb[107].mxu1 }
 0x469   :  { %v3508_v39 = vpop.f32.mrb[119].mxu0 }
 0x475   :  { %v2474_v40 = vpop.f32.mrb[108].mxu1 }
 0x476   :  { %v2495_v42 = vadd.f32 %v2474_v40, %v2362_v15  ;;  %v3527_v43 = vpop.f32.mrb[109].mxu1 }
 0x477   :  { %v2477_v44 = vpop.f32.mrb[110].mxu1 }
 0x478   :  { %v2506_v45 = vadd.f32 %v2874_v41, %v2495_v42  ;;  %v2496_v46 = vadd.f32 %v2477_v44, %v2363_v19  ;;  %v3528_v47 = vpop.f32.mrb[111].mxu1 }
 0x47a   :  { %v2510_v48 = vmul.f32 0.01, %v2506_v45  ;;  %v2507_v49 = vadd.f32 %v2874_v41, %v2496_v46 }
 0x47c   :  { %v2514_v50 = vmax.f32 %v2506_v45, %v2510_v48  ;;  %v2511_v51 = vmul.f32 0.01, %v2507_v49 }
 0x47d   :  { %v2482_v52 = vpop.f32.mrb[112].mxu1 }
 0x47e   :  { %2518 = vst.msk [vmem:[%s4444_s9] sm:$0xff] %vm44_vm2, %v2514_v50  ;;  %v2515_v53 = vmax.f32 %v2507_v49, %v2511_v51  ;;  %v3531_v54 = vpop.f32.mrb[113].mxu1 }
 0x47f   :  { %v2484_v55 = vpop.f32.mrb[114].mxu1 }
 0x480   :  { %2519 = vst.msk [vmem:[%s4444_s9 + $0x8] sm:$0xff] %vm44_vm2, %v2515_v53  ;;  %v2497_v56 = vadd.f32 %v2484_v55, %v2364_v29  ;;  %v3532_v57 = vpop.f32.mrb[115].mxu1 }
 0x482   :  { %v2508_v58 = vadd.f32 %v2874_v41, %v2497_v56 }
 0x484   :  { %v2512_v0 = vmul.f32 0.01, %v2508_v58 }
 0x485   :  { %v2489_v59 = vpop.f32.mrb[116].mxu1 }
 0x486   :  { %v2516_v60 = vmax.f32 %v2508_v58, %v2512_v0  ;;  %v2498_v61 = vadd.f32 %v2489_v59, %v2365_v37  ;;  %v3535_v62 = vpop.f32.mrb[117].mxu1 }
 0x487   :  { %v2492_v63 = vpop.f32.mrb[118].mxu1 }
 0x488   :  { %2875 = vst.msk [vmem:[%s4444_s9 + $0x10] sm:$0xff] %vm44_vm2, %v2516_v60  ;;  %v2509_v1 = vadd.f32 %v2874_v41, %v2498_v61  ;;  %v3536_v2 = vpop.f32.mrb[119].mxu1 }
 0x48a   :  { %v2513_v3 = vmul.f32 0.01, %v2509_v1 }
 0x48c   :  { %v2517_v4 = vmax.f32 %v2509_v1, %v2513_v3 }
 0x48e   :  { %2876 = vst.msk [vmem:[%s4444_s9 + $0x18] sm:$0xff] %vm44_vm2, %v2517_v4 }

</bundles_post_ra>
